<compile_context>
chip_gen: v7x
topology: tpu7x:2x2x1
jax: 0.10.0
libtpu: 0.0.40
codegen_flags: <defaults>
</compile_context>

<pallas_src>
import functools

import jax
import jax.numpy as jnp
from jax import lax
from jax.experimental import pallas as pl
from jax.experimental.pallas import tpu as pltpu


# ----------------------------- fused kernel -----------------------------
def _fused_routing_kernel(x_ref, w_ref, o_ref, *, num_iterations, n_out, out_dim,
                          approx_recip):
    # x_ref: (TB, n_in, in_dim)            activations for this batch tile (f32/bf16)
    # w_ref: (n_in, in_dim, n_out*out_dim) re-laid-out weight (f32/bf16), grid-resident
    # o_ref: (TB, n_out*out_dim)           lane-dense f32 output
    tb, n_in, _ = x_ref.shape
    m = n_out * out_dim

    # ---- prediction vectors: one batched MXU matmul for all input capsules ----
    # u[i, b, :] = x[b, i, :] @ W_i   ->  (n_in, TB, n_out*out_dim), f32 accumulation.
    u = lax.dot_general(
        x_ref[...], w_ref[...],
        dimension_numbers=(((2,), (1,)), ((1,), (0,))),
        preferred_element_type=jnp.float32)
    u4 = u.reshape(n_in, tb, n_out, out_dim)
    # TODO(synk): for very large n_in, stage u in a pltpu.VMEM scratch and stream n_in
    # chunks per iteration (pl.ds + fori_loop) to bound vreg pressure.

    # ---- routing-by-agreement iterations (all f32, VMEM resident) ----
    b_logits = jnp.zeros((n_in, tb, n_out, 1), dtype=jnp.float32)
    v = jnp.zeros((1, tb, n_out, out_dim), dtype=jnp.float32)
    for _ in range(num_iterations):  # static, small trip count -> unrolled
        # softmax over the output-capsule axis (dim=1 in the PyTorch code)
        mx = jnp.max(b_logits, axis=2, keepdims=True)
        e = jnp.exp(b_logits - mx)
        denom = jnp.sum(e, axis=2, keepdims=True)
        c = e * pl.reciprocal(denom, approx=approx_recip)        # EUP, not a VPU divide
        s = jnp.sum(c * u4, axis=0, keepdims=True)               # (1, TB, n_out, out_dim)
        sq = jnp.sum(s * s, axis=-1, keepdims=True)              # (1, TB, n_out, 1)
        scale = sq * pl.reciprocal(1.0 + sq, approx=approx_recip)
        v = s * scale * lax.rsqrt(sq + 1e-12)                    # squash (eps fixes 0/0)
        b_logits = b_logits + jnp.sum(u4 * v, axis=-1, keepdims=True)

    o_ref[...] = v[0].reshape(tb, m)


# --------------------------------- wrapper ---------------------------------
def routing_forward(x, weight, num_iterations=3, *, batch_tile=None,
                    mxu_dtype=jnp.bfloat16, approx_recip=True):
    """DeepCaps Routing forward.

    x:      (B, N_in, in_dim)
    weight: (N_out, N_in, out_dim, in_dim)   -- the module's self.weight
    returns (B, N_out, out_dim) float32      -- matches v.squeeze(2)
    """
    B, n_in, in_dim = x.shape
    n_out, n_in_w, out_dim, in_dim_w = weight.shape
    assert n_in == n_in_w and in_dim == in_dim_w
    m = n_out * out_dim

    op_dtype = jnp.float32 if mxu_dtype is None else mxu_dtype

    # One-time parameter re-layout (param-sized; in a real model fold into init):
    # (N_out, N_in, out_dim, in_dim) -> (N_in, in_dim, N_out*out_dim)
    w_m = jnp.transpose(weight, (1, 3, 0, 2)).reshape(n_in, in_dim, m).astype(op_dtype)

    # Activations: no transpose, just an (optional) cast + batch padding to the tile.
    x_in = x.astype(op_dtype)
    tb = (B if B <= 8 else 8) if batch_tile is None else batch_tile
    bp = ((B + tb - 1) // tb) * tb
    if bp != B:
        x_in = jnp.pad(x_in, ((0, bp - B), (0, 0), (0, 0)))  # zero rows squash to 0 safely
    num_tiles = bp // tb

    # VMEM budget (double-buffered x/out blocks, resident weight, u_hat live values),
    # clamped so it also fits v7x's 64 MiB physical VMEM.
    itemsize = jnp.dtype(op_dtype).itemsize
    x_blk = tb * n_in * in_dim * itemsize
    w_blk = n_in * in_dim * m * itemsize
    o_blk = tb * m * 4
    u_bytes = n_in * tb * m * 4
    vmem_est = 2 * (x_blk + o_blk) + 2 * w_blk + 4 * u_bytes + (4 << 20)
    vmem_limit = int(min(max(vmem_est, 32 << 20), 60 << 20))

    cost = pl.CostEstimate(
        flops=2 * bp * n_in * in_dim * m + num_iterations * 6 * bp * n_in * m,
        transcendentals=num_iterations * bp * n_in * n_out + 3 * num_iterations * bp * n_out,
        bytes_accessed=x_in.size * itemsize + w_m.size * itemsize + bp * m * 4)

    kernel = functools.partial(
        _fused_routing_kernel, num_iterations=num_iterations,
        n_out=n_out, out_dim=out_dim, approx_recip=approx_recip)

    v_flat = pl.pallas_call(
        kernel,
        grid=(num_tiles,),
        in_specs=[
            pl.BlockSpec((tb, n_in, in_dim), lambda b: (b, 0, 0)),  # x, native layout
            pl.BlockSpec((n_in, in_dim, m), lambda b: (0, 0, 0)),   # weight, resident
        ],
        out_specs=pl.BlockSpec((tb, m), lambda b: (b, 0)),          # lane-dense store
        out_shape=jax.ShapeDtypeStruct((bp, m), jnp.float32),
        compiler_params=pltpu.CompilerParams(
            dimension_semantics=("parallel",),
            vmem_limit_bytes=vmem_limit),
        cost_estimate=cost,
    )(x_in, w_m)
    # TODO(synk): on v7x with tiny B, add a second parallel grid axis (e.g. n_out tiles)
    # so both TensorCores get work; with grid=(1,) one TC idles.

    return v_flat[:B].reshape(B, n_out, out_dim)


# ----------------------------- pure-JAX reference ---------------------------
def routing_reference(x, weight, num_iterations=3):
    # Mirrors the PyTorch forward with axes (B, N_out, N_in, out_dim).
    u_hat = jnp.einsum('jidk,bik->bjid', weight, x)
    b = jnp.zeros(u_hat.shape[:3] + (1,), jnp.float32)
    v = None
    for _ in range(num_iterations):
        c = jax.nn.softmax(b, axis=1)
        s = jnp.sum(c * u_hat, axis=2, keepdims=True)
        sq = jnp.sum(s * s, axis=-1, keepdims=True)
        v = (sq / (1.0 + sq)) * s / jnp.sqrt(sq)
        b = b + jnp.sum(u_hat * v, axis=-1, keepdims=True)
    return v[:, :, 0, :]


if __name__ == "__main__":
    key = jax.random.PRNGKey(0)
    kx, kw = jax.random.split(key)

    B, n_in, in_dim = 2, 8, 8
    n_out, out_dim = 4, 16

    x = jax.random.normal(kx, (B, n_in, in_dim), dtype=jnp.float32)
    # Deterministic synthetic parameter: self.weight of shape
    # (num_output_capsules, num_input_capsules, out_dim, in_dim).
    weight = 0.2 * jax.random.normal(kw, (n_out, n_in, out_dim, in_dim), dtype=jnp.float32)

    ref = routing_reference(x, weight, num_iterations=3)

    # Exact path: f32 MXU operands + full-precision reciprocals -> tight match.
    out_exact = routing_forward(x, weight, num_iterations=3,
                                mxu_dtype=None, approx_recip=False)
    out_exact = jax.block_until_ready(out_exact)
    assert out_exact.shape == (B, n_out, out_dim) and out_exact.dtype == jnp.float32
    assert jnp.allclose(out_exact, ref, rtol=1e-4, atol=1e-4), \
        float(jnp.max(jnp.abs(out_exact - ref)))

    # Fast path (defaults): bf16 MXU operands (f32 accumulate) + approx EUP reciprocal.
    out_fast = routing_forward(x, weight, num_iterations=3)
    out_fast = jax.block_until_ready(out_fast)
    assert out_fast.shape == (B, n_out, out_dim)
    assert jnp.allclose(out_fast, ref, rtol=5e-2, atol=5e-2), \
        float(jnp.max(jnp.abs(out_fast - ref)))

    print("KERNEL_OK")
</pallas_src>

<mosaic_0001>
module attributes {stable_mosaic.version = 11 : i64} {
  func.func @_fused_routing_kernel(%arg0: i32, %arg1: memref<2x8x8xf32, #tpu.memory_space<vmem>>, %arg2: memref<8x8x64xf32, #tpu.memory_space<vmem>>, %arg3: memref<2x64xf32, #tpu.memory_space<vmem>>) attributes {dimension_semantics = [#tpu.dimension_semantics<parallel>], iteration_bounds = array<i64: 1>, scalar_prefetch = 0 : i64, scratch_operands = 0 : i64, tpu.core_type = #tpu.core_type<tc>, window_params = [{transform_indices = @transform_0, window_bounds = array<i64: 2, 8, 8>}, {pipeline_mode = #tpu.pipeline_mode<synchronous>, transform_indices = @transform_1, window_bounds = array<i64: 8, 8, 64>}, {transform_indices = @transform_2, window_bounds = array<i64: 2, 64>}]} {
    %c0 = arith.constant 0 : index
    %c0_0 = arith.constant 0 : index
    %c0_1 = arith.constant 0 : index
    %0 = vector.load %arg1[%c0, %c0_0, %c0_1] : memref<2x8x8xf32, #tpu.memory_space<vmem>>, vector<2x8x8xf32>
    %c0_2 = arith.constant 0 : index
    %c0_3 = arith.constant 0 : index
    %c0_4 = arith.constant 0 : index
    %1 = vector.load %arg2[%c0_2, %c0_3, %c0_4] : memref<8x8x64xf32, #tpu.memory_space<vmem>>, vector<8x8x64xf32>
    %cst = arith.constant dense<0.000000e+00> : vector<8x2x64xf32>
    %2 = tpu.matmul %0, %1, %cst {dimension_numbers = #tpu.dot_dimension_numbers<[2], [1], [0], [2], [0, 1, 0, 0, 1, 2], [1], [0]>} : vector<2x8x8xf32>, vector<8x8x64xf32>, vector<8x2x64xf32> -> vector<8x2x64xf32>
    %3 = vector.shape_cast %2 : vector<8x2x64xf32> to vector<8x2x4x16xf32>
    %cst_5 = arith.constant 0.000000e+00 : f32
    %4 = vector.broadcast %cst_5 : f32 to vector<8x2x4x1xf32>
    %cst_6 = arith.constant dense<0xFF800000> : vector<8x2x1xf32>
    %5 = vector.multi_reduction <maximumf>, %4, %cst_6 [2] : vector<8x2x4x1xf32> to vector<8x2x1xf32>
    %6 = vector.shape_cast %5 : vector<8x2x1xf32> to vector<8x2x1x1xf32>
    %7 = vector.broadcast %6 : vector<8x2x1x1xf32> to vector<8x2x4x1xf32>
    %8 = arith.subf %4, %7 : vector<8x2x4x1xf32>
    %9 = math.exp %8 : vector<8x2x4x1xf32>
    %cst_7 = arith.constant dense<0.000000e+00> : vector<8x2x1xf32>
    %10 = vector.multi_reduction <add>, %9, %cst_7 [2] : vector<8x2x4x1xf32> to vector<8x2x1xf32>
    %11 = vector.shape_cast %10 : vector<8x2x1xf32> to vector<8x2x1x1xf32>
    %12 = tpu.reciprocal %11 : vector<8x2x1x1xf32> -> vector<8x2x1x1xf32>
    %13 = vector.broadcast %12 : vector<8x2x1x1xf32> to vector<8x2x4x1xf32>
    %14 = arith.mulf %9, %13 : vector<8x2x4x1xf32>
    %15 = vector.broadcast %14 : vector<8x2x4x1xf32> to vector<8x2x4x16xf32>
    %16 = arith.mulf %15, %3 : vector<8x2x4x16xf32>
    %cst_8 = arith.constant dense<0.000000e+00> : vector<2x4x16xf32>
    %17 = vector.multi_reduction <add>, %16, %cst_8 [0] : vector<8x2x4x16xf32> to vector<2x4x16xf32>
    %18 = vector.shape_cast %17 : vector<2x4x16xf32> to vector<1x2x4x16xf32>
    %19 = arith.mulf %18, %18 : vector<1x2x4x16xf32>
    %cst_9 = arith.constant dense<0.000000e+00> : vector<1x2x4xf32>
    %20 = vector.multi_reduction <add>, %19, %cst_9 [3] : vector<1x2x4x16xf32> to vector<1x2x4xf32>
    %21 = vector.shape_cast %20 : vector<1x2x4xf32> to vector<1x2x4x1xf32>
    %cst_10 = arith.constant 1.000000e+00 : f32
    %22 = vector.broadcast %cst_10 : f32 to vector<1x2x4x1xf32>
    %23 = arith.addf %22, %21 : vector<1x2x4x1xf32>
    %24 = tpu.reciprocal %23 : vector<1x2x4x1xf32> -> vector<1x2x4x1xf32>
    %25 = arith.mulf %21, %24 : vector<1x2x4x1xf32>
    %26 = vector.broadcast %25 : vector<1x2x4x1xf32> to vector<1x2x4x16xf32>
    %27 = arith.mulf %18, %26 : vector<1x2x4x16xf32>
    %cst_11 = arith.constant 9.99999996E-13 : f32
    %28 = vector.broadcast %cst_11 : f32 to vector<1x2x4x1xf32>
    %29 = arith.addf %21, %28 : vector<1x2x4x1xf32>
    %30 = math.rsqrt %29 : vector<1x2x4x1xf32>
    %31 = vector.broadcast %30 : vector<1x2x4x1xf32> to vector<1x2x4x16xf32>
    %32 = arith.mulf %27, %31 : vector<1x2x4x16xf32>
    %33 = vector.broadcast %32 : vector<1x2x4x16xf32> to vector<8x2x4x16xf32>
    %34 = arith.mulf %3, %33 : vector<8x2x4x16xf32>
    %cst_12 = arith.constant dense<0.000000e+00> : vector<8x2x4xf32>
    %35 = vector.multi_reduction <add>, %34, %cst_12 [3] : vector<8x2x4x16xf32> to vector<8x2x4xf32>
    %36 = vector.shape_cast %35 : vector<8x2x4xf32> to vector<8x2x4x1xf32>
    %37 = arith.addf %4, %36 : vector<8x2x4x1xf32>
    %cst_13 = arith.constant dense<0xFF800000> : vector<8x2x1xf32>
    %38 = vector.multi_reduction <maximumf>, %37, %cst_13 [2] : vector<8x2x4x1xf32> to vector<8x2x1xf32>
    %39 = vector.shape_cast %38 : vector<8x2x1xf32> to vector<8x2x1x1xf32>
    %40 = vector.broadcast %39 : vector<8x2x1x1xf32> to vector<8x2x4x1xf32>
    %41 = arith.subf %37, %40 : vector<8x2x4x1xf32>
    %42 = math.exp %41 : vector<8x2x4x1xf32>
    %cst_14 = arith.constant dense<0.000000e+00> : vector<8x2x1xf32>
    %43 = vector.multi_reduction <add>, %42, %cst_14 [2] : vector<8x2x4x1xf32> to vector<8x2x1xf32>
    %44 = vector.shape_cast %43 : vector<8x2x1xf32> to vector<8x2x1x1xf32>
    %45 = tpu.reciprocal %44 : vector<8x2x1x1xf32> -> vector<8x2x1x1xf32>
    %46 = vector.broadcast %45 : vector<8x2x1x1xf32> to vector<8x2x4x1xf32>
    %47 = arith.mulf %42, %46 : vector<8x2x4x1xf32>
    %48 = vector.broadcast %47 : vector<8x2x4x1xf32> to vector<8x2x4x16xf32>
    %49 = arith.mulf %48, %3 : vector<8x2x4x16xf32>
    %cst_15 = arith.constant dense<0.000000e+00> : vector<2x4x16xf32>
    %50 = vector.multi_reduction <add>, %49, %cst_15 [0] : vector<8x2x4x16xf32> to vector<2x4x16xf32>
    %51 = vector.shape_cast %50 : vector<2x4x16xf32> to vector<1x2x4x16xf32>
    %52 = arith.mulf %51, %51 : vector<1x2x4x16xf32>
    %cst_16 = arith.constant dense<0.000000e+00> : vector<1x2x4xf32>
    %53 = vector.multi_reduction <add>, %52, %cst_16 [3] : vector<1x2x4x16xf32> to vector<1x2x4xf32>
    %54 = vector.shape_cast %53 : vector<1x2x4xf32> to vector<1x2x4x1xf32>
    %cst_17 = arith.constant 1.000000e+00 : f32
    %55 = vector.broadcast %cst_17 : f32 to vector<1x2x4x1xf32>
    %56 = arith.addf %55, %54 : vector<1x2x4x1xf32>
    %57 = tpu.reciprocal %56 : vector<1x2x4x1xf32> -> vector<1x2x4x1xf32>
    %58 = arith.mulf %54, %57 : vector<1x2x4x1xf32>
    %59 = vector.broadcast %58 : vector<1x2x4x1xf32> to vector<1x2x4x16xf32>
    %60 = arith.mulf %51, %59 : vector<1x2x4x16xf32>
    %cst_18 = arith.constant 9.99999996E-13 : f32
    %61 = vector.broadcast %cst_18 : f32 to vector<1x2x4x1xf32>
    %62 = arith.addf %54, %61 : vector<1x2x4x1xf32>
    %63 = math.rsqrt %62 : vector<1x2x4x1xf32>
    %64 = vector.broadcast %63 : vector<1x2x4x1xf32> to vector<1x2x4x16xf32>
    %65 = arith.mulf %60, %64 : vector<1x2x4x16xf32>
    %66 = vector.broadcast %65 : vector<1x2x4x16xf32> to vector<8x2x4x16xf32>
    %67 = arith.mulf %3, %66 : vector<8x2x4x16xf32>
    %cst_19 = arith.constant dense<0.000000e+00> : vector<8x2x4xf32>
    %68 = vector.multi_reduction <add>, %67, %cst_19 [3] : vector<8x2x4x16xf32> to vector<8x2x4xf32>
    %69 = vector.shape_cast %68 : vector<8x2x4xf32> to vector<8x2x4x1xf32>
    %70 = arith.addf %37, %69 : vector<8x2x4x1xf32>
    %cst_20 = arith.constant dense<0xFF800000> : vector<8x2x1xf32>
    %71 = vector.multi_reduction <maximumf>, %70, %cst_20 [2] : vector<8x2x4x1xf32> to vector<8x2x1xf32>
    %72 = vector.shape_cast %71 : vector<8x2x1xf32> to vector<8x2x1x1xf32>
    %73 = vector.broadcast %72 : vector<8x2x1x1xf32> to vector<8x2x4x1xf32>
    %74 = arith.subf %70, %73 : vector<8x2x4x1xf32>
    %75 = math.exp %74 : vector<8x2x4x1xf32>
    %cst_21 = arith.constant dense<0.000000e+00> : vector<8x2x1xf32>
    %76 = vector.multi_reduction <add>, %75, %cst_21 [2] : vector<8x2x4x1xf32> to vector<8x2x1xf32>
    %77 = vector.shape_cast %76 : vector<8x2x1xf32> to vector<8x2x1x1xf32>
    %78 = tpu.reciprocal %77 : vector<8x2x1x1xf32> -> vector<8x2x1x1xf32>
    %79 = vector.broadcast %78 : vector<8x2x1x1xf32> to vector<8x2x4x1xf32>
    %80 = arith.mulf %75, %79 : vector<8x2x4x1xf32>
    %81 = vector.broadcast %80 : vector<8x2x4x1xf32> to vector<8x2x4x16xf32>
    %82 = arith.mulf %81, %3 : vector<8x2x4x16xf32>
    %cst_22 = arith.constant dense<0.000000e+00> : vector<2x4x16xf32>
    %83 = vector.multi_reduction <add>, %82, %cst_22 [0] : vector<8x2x4x16xf32> to vector<2x4x16xf32>
    %84 = vector.shape_cast %83 : vector<2x4x16xf32> to vector<1x2x4x16xf32>
    %85 = arith.mulf %84, %84 : vector<1x2x4x16xf32>
    %cst_23 = arith.constant dense<0.000000e+00> : vector<1x2x4xf32>
    %86 = vector.multi_reduction <add>, %85, %cst_23 [3] : vector<1x2x4x16xf32> to vector<1x2x4xf32>
    %87 = vector.shape_cast %86 : vector<1x2x4xf32> to vector<1x2x4x1xf32>
    %cst_24 = arith.constant 1.000000e+00 : f32
    %88 = vector.broadcast %cst_24 : f32 to vector<1x2x4x1xf32>
    %89 = arith.addf %88, %87 : vector<1x2x4x1xf32>
    %90 = tpu.reciprocal %89 : vector<1x2x4x1xf32> -> vector<1x2x4x1xf32>
    %91 = arith.mulf %87, %90 : vector<1x2x4x1xf32>
    %92 = vector.broadcast %91 : vector<1x2x4x1xf32> to vector<1x2x4x16xf32>
    %93 = arith.mulf %84, %92 : vector<1x2x4x16xf32>
    %cst_25 = arith.constant 9.99999996E-13 : f32
    %94 = vector.broadcast %cst_25 : f32 to vector<1x2x4x1xf32>
    %95 = arith.addf %87, %94 : vector<1x2x4x1xf32>
    %96 = math.rsqrt %95 : vector<1x2x4x1xf32>
    %97 = vector.broadcast %96 : vector<1x2x4x1xf32> to vector<1x2x4x16xf32>
    %98 = arith.mulf %93, %97 : vector<1x2x4x16xf32>
    %99 = vector.shape_cast %98 : vector<1x2x4x16xf32> to vector<2x4x16xf32>
    %100 = vector.shape_cast %99 : vector<2x4x16xf32> to vector<2x64xf32>
    %c0_26 = arith.constant 0 : index
    %c0_27 = arith.constant 0 : index
    %101 = vector.load %arg3[%c0_26, %c0_27] : memref<2x64xf32, #tpu.memory_space<vmem>>, vector<2x64xf32>
    tpu.vector_store %arg3[%c0_26, %c0_27], %100 {strides = array<i32>} : memref<2x64xf32, #tpu.memory_space<vmem>>, vector<2x64xf32>,
    return
  }
  func.func @transform_0(%arg0: i32) -> (i32, i32, i32) {
    %c0_i32 = arith.constant 0 : i32
    %c0_i32_0 = arith.constant 0 : i32
    %c0_i32_1 = arith.constant 0 : i32
    return %arg0, %c0_i32, %c0_i32_0 : i32, i32, i32
  }
  func.func @transform_1(%arg0: i32) -> (i32, i32, i32) {
    %c0_i32 = arith.constant 0 : i32
    %c0_i32_0 = arith.constant 0 : i32
    %c0_i32_1 = arith.constant 0 : i32
    %c0_i32_2 = arith.constant 0 : i32
    return %c0_i32, %c0_i32_0, %c0_i32_1 : i32, i32, i32
  }
  func.func @transform_2(%arg0: i32) -> (i32, i32) {
    %c0_i32 = arith.constant 0 : i32
    %c0_i32_0 = arith.constant 0 : i32
    return %arg0, %c0_i32 : i32, i32
  }
}

</mosaic_0001>

<bundles_post_ra>
// kernel: tpu_custom_call.1
= control target key start
LH: loop header
LB: loop body
LE: loop exit
PB: predicated region body
PF: predicated region fallthrough
CT: control target
= control target key end

     0   :  { %7 = vsyncpa [#allocation3], 0  ;;  %s3140_s0 = inlined_call_operand.hbm [shape: f32[2,8,8], index: 0, kind: input, shape index: {}]   ;;  %s3141_s1 = inlined_call_operand.hbm [shape: f32[8,8,64], index: 1, kind: input, shape index: {}]   ;;  %s3142_s2 = inlined_call_operand.hbm [shape: f32[2,64], index: 2, kind: output, shape index: {}]  }
   0x1   :  { %8 = vsyncpa [#allocation6], 0 }
   0x2   :  { %9 = vsyncpa [#allocation4], 0  ;;  %s2336_s9 = smov [#allocation2]   ;;  %s2264_s13 = scalar_lea.hbm %s3140_s0, 256 }
   0x3   :  { %s15_s10 = sshll.u32 %s2336_s9, 4  ;;  %p2265_p0 = scmp.ne.s32.totalorder %s3140_s0, %s2264_s13  ;;  %s16_s10 = int_to_ptr.vmem [resolvable:$true] %s15_s10 }
   0x4   :  { %p2268_p1 = scmp.lt.u32.totalorder %s2264_s13, %s3140_s0 }
   0x6   :  { %p2270_p2 = pnand %p2268_p1, %p2265_p0 }
   0x8   :  { %2273 = shalt.err (!%p2270_p2)
}
   0x9   :  { %s2274_s18 = scalar_lea.vmem %s16_s10, 256  ;;  %p2279_p4 = scmp.lt.s32.totalorder %s16_s10, %s16_s10 }
   0xa   :  { %p2275_p3 = scmp.ne.s32.totalorder %s16_s10, %s2274_s18  ;;  %p2280_p5 = scmp.lt.s32.totalorder %s2274_s18, %s2274_s18 }
   0xc   :  { %p2281_p6 = por %p2280_p5, %p2279_p4 }
   0xe   :  { %p2282_p7 = pnand %p2281_p6, %p2275_p3 }
  0x10   :  { %2285 = shalt.err (!%p2282_p7)
}
  0x11   :  { %s2337_s19 = smov 128   ;;  %s2338_s20 = smov 8  }
  0x12   :  { %21 = dma.hbm_to_vmem [thread:$0]  %s3140_s0, 256, %s16_s10, [#allocation3], %s2337_s19, %s2337_s19, %s2338_s20  }
  0x13   :  { %s2339_s23 = smov [#allocation5]   ;;  %s2286_s27 = scalar_lea.hbm %s3141_s1, 1024 }
  0x14   :  { %s27_s24 = sshll.u32 %s2339_s23, 4  ;;  %p2287_p8 = scmp.ne.s32.totalorder %s3141_s1, %s2286_s27  ;;  %s28_s24 = int_to_ptr.vmem [resolvable:$true] %s27_s24 }
  0x15   :  { %p2290_p9 = scmp.lt.u32.totalorder %s2286_s27, %s3141_s1 }
  0x17   :  { %p2292_p10 = pnand %p2290_p9, %p2287_p8 }
  0x19   :  { %2295 = shalt.err (!%p2292_p10)
}
  0x1a   :  { %s2296_s4 = scalar_lea.vmem %s28_s24, 1024  ;;  %p2301_p12 = scmp.lt.s32.totalorder %s28_s24, %s28_s24 }
  0x1b   :  { %p2297_p11 = scmp.ne.s32.totalorder %s28_s24, %s2296_s4  ;;  %p2302_p13 = scmp.lt.s32.totalorder %s2296_s4, %s2296_s4 }
  0x1d   :  { %p2303_p0 = por %p2302_p13, %p2301_p12 }
  0x1f   :  { %p2304_p1 = pnand %p2303_p0, %p2297_p11 }
  0x21   :  { %2307 = shalt.err (!%p2304_p1)
}
  0x22   :  { %33 = dma.hbm_to_vmem [thread:$0]  %s3141_s1, 1024, %s28_s24, [#allocation6], %s2337_s19, %s2337_s19, %s2338_s20  }
  0x23   :  { %2330 = dma.done.wait [#allocation3], 256  }
  0x24   :  { %2331 = vsyncadd [#allocation3], 4294967040 }
  0x25   :  { %2332 = dma.done.wait [#allocation6], 1024  }
  0x26   :  { %2333 = vsyncadd [#allocation6], 4294966272  ;;  %v54_v0 = vlaneseq  ;;  %v3143_v1 = vmov 0.0   ;;  %vm2341_vm0 = vmmov 0   ;;  %v2342_v2 = vmov 1983009808  }
  0x27   :  { %2055 = vmatprep.subr.mxu0 %v3143_v1  ;;  %2057 = vmatprep.mubr.msk.f32.mxu0 %vm2341_vm0, %v3143_v1  ;;  %v52_v3 = vunpack.c.l.s4 %v2342_v2  ;;  %v2343_v5 = vmov 1934713408   ;;  %v42_v10 = vld [vmem:[#allocation5] sm:$0xff]  ;;  %v40_v11 = vld [vmem:[#allocation2] sm:$0xff]  ;;  %v41_v12 = vld [vmem:[#allocation2 + $0x8] sm:$0xff]  ;;  %vm116_vm1 = vcmask 64512  }
  0x28   :  { %v55_v4 = vshrl.u32 %v54_v0, 7  ;;  %v83_v6 = vunpack.c.l.s4 %v2343_v5  ;;  %2060 = vmatprep.subr.mxu1 %v3143_v1  ;;  %2062 = vmatprep.mubr.msk.f32.mxu1 %vm2341_vm0, %v3143_v1  ;;  %v50_v14 = vcombine.high %v40_v11, %v3143_v1  ;;  %v65_v16 = vcombine.high %v41_v12, %v3143_v1  ;;  %v43_v18 = vld [vmem:[#allocation5 + $0x8] sm:$0xff]  ;;  %v44_v24 = vld [vmem:[#allocation5 + $0x10] sm:$0xff]  ;;  %v45_v27 = vld [vmem:[#allocation5 + $0x18] sm:$0xff]  ;;  %s2344_s1 = smov 96   ;;  %s2345_s6 = smov 112  }
  0x29   :  { %v53_v7 = vunpack.c.0.s8 %v52_v3  ;;  %2056 = vmatpush3.msra.mxu0 %v42_v10  ;;  %2061 = vmatpush3.msra.mxu1 %v43_v18  ;;  %v46_v30 = vld [vmem:[#allocation5 + $0x20] sm:$0xff]  ;;  %v47_v32 = vld [vmem:[#allocation5 + $0x28] sm:$0xff]  ;;  %v48_v35 = vld [vmem:[#allocation5 + $0x30] sm:$0xff]  ;;  %s2346_s7 = smov 80   ;;  %vm981_vm2 = vcmask 1043456   ;;  %vm1006_vm3 = vcmask 125952  }
  0x2a   :  { %v84_v8 = vunpack.c.0.s8 %v83_v6  ;;  %2065 = vmatprep.subr.mxu0 %v3143_v1  ;;  %2070 = vmatprep.subr.mxu1 %v3143_v1  ;;  %v49_v37 = vld [vmem:[#allocation5 + $0x38] sm:$0xff]  ;;  %v982_v55 = vsel %vm981_vm2, 1.0, %v3143_v1  ;;  %s2347_s8 = smov 32   ;;  %s2348_s9 = smov 16   ;;  %vm2007_vm4 = vcmask 130048   ;;  %vm2009_vm5 = vcmask 261120  }
  0x2b   :  { %v2396_v9 = vsub.s32 %v53_v7, %v55_v4  ;;  %v983_v58 = vrot.slane %v982_v55, 4  ;;  %s2349_s10 = smov 48   ;;  %s2350_s11 = smov [#allocation7]   ;;  %vm2011_vm6 = vcmask 392192   ;;  %vm2013_vm7 = vcmask 517120  }
  0x2c   :  { %v2398_v13 = vsub.s32 %v84_v8, %v55_v4  ;;  %s2021_s12 = sshll.u32 %s2350_s11, 4  ;;  %s2022_s12 = int_to_ptr.vmem [resolvable:$true] %s2021_s12 }
  0x2d   :  { %3183 = vst [vmem:[#allocation11_spill] sm:$0xff] %v2396_v9  ;;  %v57_v15 = vrot.slane %v40_v11, %v2396_v9  ;;  %v72_v17 = vrot.slane %v41_v12, %v2396_v9  ;;  %v64_v19 = vrot.slane %v50_v14, %v2396_v9  ;;  %v79_v20 = vrot.slane %v65_v16, %v2396_v9  ;;  %s2308_s13 = scalar_lea.vmem %s2022_s12, 32  ;;  %p2313_p3 = scmp.lt.s32.totalorder %s2022_s12, %s2022_s12 }
  0x2e   :  { %3184 = vst [vmem:[#allocation12_spill] sm:$0xff] %v2398_v13  ;;  %v984_v61 = vadd.f32 %v983_v58, %v982_v55  ;;  %p2309_p2 = scmp.ne.s32.totalorder %s2022_s12, %s2308_s13  ;;  %p2314_p4 = scmp.lt.s32.totalorder %s2308_s13, %s2308_s13 }
  0x2f   :  { %v80_v21 = vcombine.low %v57_v15, %v72_v17  ;;  %v81_v22 = vcombine.high %v57_v15, %v72_v17  ;;  %v96_v28 = vcombine.low %v64_v19, %v79_v20  ;;  %v97_v33 = vcombine.high %v64_v19, %v79_v20 }
  0x30   :  { %v985_v0 = vrot.slane %v984_v61, 2  ;;  %p2315_p5 = por %p2314_p4, %p2313_p3 }
  0x31   :  { %v88_v23 = vrot.slane %v80_v21, %v2398_v13  ;;  %v95_v26 = vrot.slane %v81_v22, %v2398_v13  ;;  %v104_v31 = vrot.slane %v96_v28, %v2398_v13  ;;  %v111_v36 = vrot.slane %v97_v33, %v2398_v13 }
  0x32   :  { %v986_v4 = vadd.f32 %v985_v0, %v984_v61  ;;  %p2316_p6 = pnand %p2315_p5, %p2309_p2 }
  0x33   :  { %2058 = vmatmul.mubr.msk.f32.vlgmr.msra.gmra.mrb[0].mxu0 %vm116_vm1, %v88_v23  ;;  %v112_v25 = vcombine.high %v88_v23, %v3143_v1  ;;  %v113_v29 = vcombine.high %v95_v26, %v3143_v1  ;;  %v114_v34 = vcombine.high %v104_v31, %v3143_v1  ;;  %v115_v38 = vcombine.high %v111_v36, %v3143_v1 }
  0x34   :  { %2066 = vmatpush3.msra.mxu0 %v44_v24  ;;  %2067 = vmatprep.mubr.msk.f32.mxu0 %vm2341_vm0, %v3143_v1  ;;  %v987_v7 = vrot.slane %v986_v4, 1 }
  0x35   :  { %2063 = vmatmul.mubr.msk.f32.vlgmr.msra.gmra.mrb[0].mxu1 %vm116_vm1, %v112_v25  ;;  %2075 = vmatprep.subr.mxu0 %v3143_v1 }
  0x36   :  { %2071 = vmatpush3.msra.mxu1 %v45_v27  ;;  %2072 = vmatprep.mubr.msk.f32.mxu1 %vm2341_vm0, %v3143_v1  ;;  %v988_v17 = vadd.f32 %v987_v7, %v986_v4 }
  0x37   :  { %2068 = vmatmul.mubr.msk.f32.vlgmr.msra.gmra.mrb[2].mxu0 %vm116_vm1, %v95_v26  ;;  %2080 = vmatprep.subr.mxu1 %v3143_v1 }
  0x38   :  { %2076 = vmatpush3.msra.mxu0 %v46_v30  ;;  %2077 = vmatprep.mubr.msk.f32.mxu0 %vm2341_vm0, %v3143_v1  ;;  %2110 = vrcp.f32 %v988_v17 }
  0x39   :  { %2073 = vmatmul.mubr.msk.f32.vlgmr.msra.gmra.mrb[2].mxu1 %vm116_vm1, %v113_v29  ;;  %2085 = vmatprep.subr.mxu0 %v3143_v1 }
  0x3a   :  { %2081 = vmatpush3.msra.mxu1 %v47_v32  ;;  %2082 = vmatprep.mubr.msk.f32.mxu1 %vm2341_vm0, %v3143_v1 }
  0x3b   :  { %2078 = vmatmul.mubr.msk.f32.vlgmr.msra.gmra.mrb[4].mxu0 %vm116_vm1, %v104_v31  ;;  %2090 = vmatprep.subr.mxu1 %v3143_v1 }
  0x3c   :  { %2086 = vmatpush3.msra.mxu0 %v48_v35  ;;  %2087 = vmatprep.mubr.msk.f32.mxu0 %vm2341_vm0, %v3143_v1 }
  0x3d   :  { %2083 = vmatmul.mubr.msk.f32.vlgmr.msra.gmra.mrb[4].mxu1 %vm116_vm1, %v114_v34 }
  0x3e   :  { %2091 = vmatpush3.msra.mxu1 %v49_v37  ;;  %2092 = vmatprep.mubr.msk.f32.mxu1 %vm2341_vm0, %v3143_v1 }
  0x3f   :  { %2088 = vmatmul.mubr.msk.f32.vlgmr.msra.gmra.mrb[6].mxu0 %vm116_vm1, %v111_v36 }
  0x41   :  { %2093 = vmatmul.mubr.msk.f32.vlgmr.msra.gmra.mrb[6].mxu1 %vm116_vm1, %v115_v38 }
 0x106   :  { %v2440_v39 = vpop.f32.mrb[0].mxu0 }
 0x107   :  { %733 = vrot.lane.b32.xlu1 %v2440_v39, %s2344_s1  ;;  %709 = vrot.lane.b32.xlu0 %v2440_v39, %s2345_s6  ;;  %v2059_v40 = vpop.f32.mrb[1].mxu0 }
 0x108   :  { %v2446_v41 = vpop.f32.mrb[0].mxu1 }
 0x109   :  { %v2064_v42 = vpop.f32.mrb[1].mxu1 }
 0x10a   :  { %v2448_v43 = vpop.f32.mrb[2].mxu0 }
 0x10b   :  { %757 = vrot.lane.b32.xlu0 %v2440_v39, %s2346_s7  ;;  %735 = vrot.lane.b32.xlu1 %v2446_v41, %s2344_s1  ;;  %v2069_v44 = vpop.f32.mrb[3].mxu0 }
 0x10c   :  { %v2454_v45 = vpop.f32.mrb[2].mxu1 }
 0x10d   :  { %v2074_v46 = vpop.f32.mrb[3].mxu1 }
 0x10e   :  { %v2456_v47 = vpop.f32.mrb[4].mxu0 }
 0x10f   :  { %759 = vrot.lane.b32.xlu1 %v2446_v41, %s2346_s7  ;;  %711 = vrot.lane.b32.xlu0 %v2446_v41, %s2345_s6  ;;  %v2079_v48 = vpop.f32.mrb[5].mxu0 }
 0x110   :  { %v2462_v49 = vpop.f32.mrb[4].mxu1 }
 0x111   :  { %v2084_v50 = vpop.f32.mrb[5].mxu1 }
 0x112   :  { %v2464_v51 = vpop.f32.mrb[6].mxu0  ;;  %v2531_v50 = vpop.eup %2110 }
 0x113   :  { %737 = vrot.lane.b32.xlu1 %v2448_v43, %s2344_s1  ;;  %713 = vrot.lane.b32.xlu0 %v2448_v43, %s2345_s6  ;;  %v2089_v52 = vpop.f32.mrb[7].mxu0 }
 0x114   :  { %v2470_v53 = vpop.f32.mrb[6].mxu1 }
 0x115   :  { %v2094_v54 = vpop.f32.mrb[7].mxu1 }
 0x117   :  { %761 = vrot.lane.b32.xlu0 %v2448_v43, %s2346_s7  ;;  %715 = vrot.lane.b32.xlu1 %v2454_v45, %s2345_s6 }
 0x11b   :  { %739 = vrot.lane.b32.xlu0 %v2454_v45, %s2344_s1  ;;  %763 = vrot.lane.b32.xlu1 %v2454_v45, %s2346_s7 }
 0x11f   :  { %741 = vrot.lane.b32.xlu1 %v2456_v47, %s2344_s1  ;;  %717 = vrot.lane.b32.xlu0 %v2456_v47, %s2345_s6 }
 0x123   :  { %765 = vrot.lane.b32.xlu0 %v2456_v47, %s2346_s7  ;;  %719 = vrot.lane.b32.xlu1 %v2462_v49, %s2345_s6 }
 0x127   :  { %743 = vrot.lane.b32.xlu0 %v2462_v49, %s2344_s1  ;;  %767 = vrot.lane.b32.xlu1 %v2462_v49, %s2346_s7 }
 0x12b   :  { %721 = vrot.lane.b32.xlu0 %v2464_v51, %s2345_s6  ;;  %745 = vrot.lane.b32.xlu1 %v2464_v51, %s2344_s1 }
 0x12f   :  { %769 = vrot.lane.b32.xlu0 %v2464_v51, %s2346_s7  ;;  %723 = vrot.lane.b32.xlu1 %v2470_v53, %s2345_s6 }
 0x133   :  { %747 = vrot.lane.b32.xlu0 %v2470_v53, %s2344_s1  ;;  %771 = vrot.lane.b32.xlu1 %v2470_v53, %s2346_s7 }
 0x179   :  { %v734_v56 = vpop.permute.xlu1 %733  ;;  %v710_v57 = vpop.permute.xlu0 %709 }
 0x17a   :  { %v781_v11 = vcombine.low %v2440_v39, %v734_v56 }
 0x17c   :  { %v788_v23 = vrot.slane %v781_v11, %v2396_v9 }
 0x17d   :  { %v758_v59 = vpop.permute.xlu0 %757  ;;  %v736_v60 = vpop.permute.xlu1 %735 }
 0x17e   :  { %v789_v8 = vcombine.low %v710_v57, %v758_v59  ;;  %v806_v12 = vcombine.low %v2446_v41, %v736_v60 }
 0x180   :  { %v796_v18 = vrot.slane %v789_v8, %v2396_v9  ;;  %v813_v24 = vrot.slane %v806_v12, %v2396_v9 }
 0x181   :  { %v760_v62 = vpop.permute.xlu1 %759  ;;  %v712_v63 = vpop.permute.xlu0 %711 }
 0x182   :  { %v814_v10 = vcombine.low %v712_v63, %v760_v62  ;;  %v797_v28 = vcombine.low %v788_v23, %v796_v18 }
 0x184   :  { %v821_v19 = vrot.slane %v814_v10, %v2396_v9  ;;  %v2520_v38 = vrot.slane %v797_v28, %v2398_v13 }
 0x185   :  { %v738_v2 = vpop.permute.xlu1 %737  ;;  %v714_v3 = vpop.permute.xlu0 %713 }
 0x186   :  { %v831_v20 = vcombine.low %v2448_v43, %v738_v2  ;;  %v822_v29 = vcombine.low %v813_v24, %v821_v19  ;;  %v2535_v52 = vcombine.high %v2520_v38, %v3143_v1  ;;  %v990_v62 = vmul.f32 %v2531_v50, %v2520_v38 }
 0x188   :  { %v838_v30 = vrot.slane %v831_v20, %v2396_v9  ;;  %v2523_v39 = vrot.slane %v822_v29, %v2398_v13  ;;  %v991_v2 = vmul.f32 %v2531_v50, %v2535_v52 }
 0x189   :  { %v762_v5 = vpop.permute.xlu0 %761  ;;  %v716_v6 = vpop.permute.xlu1 %715 }
 0x18a   :  { %v839_v14 = vcombine.low %v714_v3, %v762_v5  ;;  %v2539_v54 = vcombine.high %v2523_v39, %v3143_v1  ;;  %v992_v63 = vmul.f32 %v2531_v50, %v2523_v39  ;;  %v1022_v18 = vsel %vm1006_vm3, %v991_v2, 0.0 }
 0x18c   :  { %v846_v25 = vrot.slane %v839_v14, %v2396_v9  ;;  %v993_v3 = vmul.f32 %v2531_v50, %v2539_v54 }
 0x18d   :  { %v740_v15 = vpop.permute.xlu0 %739  ;;  %v764_v16 = vpop.permute.xlu1 %763 }
 0x18e   :  { %v856_v21 = vcombine.low %v2454_v45, %v740_v15  ;;  %v864_v22 = vcombine.low %v716_v6, %v764_v16  ;;  %v847_v34 = vcombine.low %v838_v30, %v846_v25  ;;  %v1007_v15 = vsel %vm1006_vm3, %v990_v62, 0.0 }
 0x18f   :  { %v1023_v19 = vsel %vm1006_vm3, %v993_v3, 0.0 }
 0x190   :  { %v863_v31 = vrot.slane %v856_v21, %v2396_v9  ;;  %v871_v32 = vrot.slane %v864_v22, %v2396_v9  ;;  %v2528_v43 = vrot.slane %v847_v34, %v2398_v13 }
 0x191   :  { %v742_v26 = vpop.permute.xlu1 %741  ;;  %v718_v27 = vpop.permute.xlu0 %717 }
 0x192   :  { %v881_v33 = vcombine.low %v2456_v47, %v742_v26  ;;  %v872_v40 = vcombine.low %v863_v31, %v871_v32  ;;  %v994_v6 = vmul.f32 %v2531_v50, %v2528_v43 }
 0x194   :  { %v888_v41 = vrot.slane %v881_v33, %v2396_v9  ;;  %v2542_v55 = vrot.slane %v872_v40, %v2398_v13  ;;  %v1010_v22 = vsel %vm1006_vm3, %v994_v6, 0.0 }
 0x195   :  { %v766_v35 = vpop.permute.xlu0 %765  ;;  %v720_v36 = vpop.permute.xlu1 %719 }
 0x196   :  { %v889_v37 = vcombine.low %v718_v27, %v766_v35  ;;  %v2559_v0 = vcombine.high %v2542_v55, %v3143_v1  ;;  %v996_v11 = vmul.f32 %v2531_v50, %v2542_v55 }
 0x198   :  { %v896_v42 = vrot.slane %v889_v37, %v2396_v9  ;;  %3185 = vst [vmem:[#allocation13_spill] sm:$0xff] %v2559_v0  ;;  %v997_v17 = vmul.f32 %v2531_v50, %v2559_v0  ;;  %v1012_v27 = vsel %vm1006_vm3, %v996_v11, 0.0 }
 0x199   :  { %v744_v44 = vpop.permute.xlu0 %743  ;;  %v768_v45 = vpop.permute.xlu1 %767 }
 0x19a   :  { %v897_v46 = vcombine.low %v888_v41, %v896_v42  ;;  %v906_v47 = vcombine.low %v2462_v49, %v744_v44  ;;  %v914_v48 = vcombine.low %v720_v36, %v768_v45  ;;  %v2548_v49 = vcombine.high %v2528_v43, %v3143_v1 }
 0x19b   :  { %v1024_v36 = vadd.f32 %v1023_v19, %v1022_v18  ;;  %v1027_v37 = vsel %vm1006_vm3, %v997_v17, 0.0 }
 0x19c   :  { %v913_v56 = vrot.slane %v906_v47, %v2396_v9  ;;  %v921_v57 = vrot.slane %v914_v48, %v2396_v9  ;;  %v2551_v58 = vrot.slane %v897_v46, %v2398_v13  ;;  %v995_v12 = vmul.f32 %v2531_v50, %v2548_v49 }
 0x19d   :  { %v722_v59 = vpop.permute.xlu0 %721  ;;  %v746_v60 = vpop.permute.xlu1 %745 }
 0x19e   :  { %v922_v61 = vcombine.low %v913_v56, %v921_v57  ;;  %v931_v5 = vcombine.low %v2464_v51, %v746_v60  ;;  %v2573_v7 = vcombine.high %v2551_v58, %v3143_v1  ;;  %v1008_v51 = vsel %vm1006_vm3, %v992_v63, 0.0 }
 0x19f   :  { %v998_v16 = vmul.f32 %v2531_v50, %v2551_v58  ;;  %v1009_v26 = vadd.f32 %v1008_v51, %v1007_v15  ;;  %v1025_v29 = vsel %vm1006_vm3, %v995_v12, 0.0 }
 0x1a0   :  { %v2566_v4 = vrot.slane %v922_v61, %v2398_v13  ;;  %3186 = vst [vmem:[#allocation14_spill] sm:$0xff] %v2573_v7  ;;  %v938_v20 = vrot.slane %v931_v5, %v2396_v9  ;;  %v999_v28 = vmul.f32 %v2531_v50, %v2573_v7  ;;  %v1026_v45 = vadd.f32 %v1025_v29, %v1024_v36 }
 0x1a1   :  { %v770_v8 = vpop.permute.xlu0 %769  ;;  %v724_v10 = vpop.permute.xlu1 %723  ;;  %v1011_v34 = vadd.f32 %v1010_v22, %v1009_v26  ;;  %v1014_v35 = vsel %vm1006_vm3, %v998_v16, 0.0 }
 0x1a2   :  { %v939_v14 = vcombine.low %v722_v59, %v770_v8  ;;  %v2592_v23 = vcombine.high %v2566_v4, %v3143_v1  ;;  %v1000_v33 = vmul.f32 %v2531_v50, %v2566_v4  ;;  %v1029_v46 = vsel %vm1006_vm3, %v999_v28, 0.0 }
 0x1a3   :  { %v1013_v44 = vadd.f32 %v1012_v27, %v1011_v34  ;;  %v1028_v60 = vadd.f32 %v1027_v37, %v1026_v45 }
 0x1a4   :  { %v946_v21 = vrot.slane %v939_v14, %v2396_v9  ;;  %3187 = vst [vmem:[#allocation15_spill] sm:$0xff] %v2592_v23  ;;  %v1016_v56 = vsel %vm1006_vm3, %v1000_v33, 0.0 }
 0x1a5   :  { %v748_v24 = vpop.permute.xlu0 %747  ;;  %v772_v25 = vpop.permute.xlu1 %771  ;;  %v1015_v59 = vadd.f32 %v1014_v35, %v1013_v44  ;;  %v1030_v5 = vadd.f32 %v1029_v46, %v1028_v60 }
 0x1a6   :  { %v947_v30 = vcombine.low %v938_v20, %v946_v21  ;;  %v956_v31 = vcombine.low %v2470_v53, %v748_v24  ;;  %v964_v32 = vcombine.low %v724_v10, %v772_v25  ;;  %v1001_v53 = vmul.f32 %v2531_v50, %v2592_v23 }
 0x1a7   :  { %v1017_v3 = vadd.f32 %v1016_v56, %v1015_v59 }
 0x1a8   :  { %v2604_v40 = vrot.slane %v947_v30, %v2398_v13  ;;  %v963_v41 = vrot.slane %v956_v31, %v2396_v9  ;;  %v971_v42 = vrot.slane %v964_v32, %v2396_v9  ;;  %v1031_v2 = vsel %vm1006_vm3, %v1001_v53, 0.0 }
 0x1a9   :  { %v1032_v12 = vadd.f32 %v1031_v2, %v1030_v5 }
 0x1aa   :  { %3188 = vst [vmem:[#allocation16_spill] sm:$0xff] %v2604_v40  ;;  %v972_v47 = vcombine.low %v963_v41, %v971_v42  ;;  %v1002_v48 = vmul.f32 %v2531_v50, %v2604_v40  ;;  %v2616_v57 = vcombine.high %v2604_v40, %v3143_v1 }
 0x1ac   :  { %3189 = vst [vmem:[#allocation17_spill] sm:$0xff] %v2616_v57  ;;  %v2619_v61 = vrot.slane %v972_v47, %v2398_v13  ;;  %v1018_v62 = vsel %vm1006_vm3, %v1002_v48, 0.0  ;;  %v1003_v63 = vmul.f32 %v2531_v50, %v2616_v57 }
 0x1ad   :  { %v1019_v11 = vadd.f32 %v1018_v62, %v1017_v3 }
 0x1ae   :  { %3190 = vst [vmem:[#allocation18_spill] sm:$0xff] %v2619_v61  ;;  %v1004_v6 = vmul.f32 %v2531_v50, %v2619_v61  ;;  %v2629_v8 = vcombine.high %v2619_v61, %v3143_v1  ;;  %v1033_v10 = vsel %vm1006_vm3, %v1003_v63, 0.0 }
 0x1af   :  { %v1034_v16 = vadd.f32 %v1033_v10, %v1032_v12 }
 0x1b0   :  { %3191 = vst [vmem:[#allocation19_spill] sm:$0xff] %v2629_v8  ;;  %v1020_v14 = vsel %vm1006_vm3, %v1004_v6, 0.0  ;;  %v1005_v15 = vmul.f32 %v2531_v50, %v2629_v8 }
 0x1b1   :  { %v1021_v51 = vadd.f32 %v1020_v14, %v1019_v11 }
 0x1b2   :  { %v1035_v17 = vsel %vm1006_vm3, %v1005_v15, 0.0 }
 0x1b3   :  { %v1037_v18 = vmul.f32 %v1021_v51, %v1021_v51  ;;  %v1036_v19 = vadd.f32 %v1035_v17, %v1034_v16 }
 0x1b5   :  { %v1039_v20 = vsel %vm1006_vm3, %v1037_v18, 0.0  ;;  %v1038_v21 = vmul.f32 %v1036_v19, %v1036_v19 }
 0x1b6   :  { %1040 = vadd.xlane.f32.xlu0 %v1039_v20 }
 0x1b7   :  { %v1042_v22 = vsel %vm1006_vm3, %v1038_v21, 0.0 }
 0x1b8   :  { %1043 = vadd.xlane.f32.xlu1 %v1042_v22 }
 0x243   :  { %v1041_v24 = vpop.xlane.xlu0 %1040 }
 0x244   :  { %v1045_v25 = vadd.f32 1.0, %v1041_v24  ;;  %v1053_v27 = vadd.f32 1e-12, %v1041_v24 }
 0x245   :  { %v1044_v26 = vpop.xlane.xlu1 %1043 }
 0x246   :  { %2112 = vrcp.f32 %v1045_v25  ;;  %v1046_v28 = vadd.f32 1.0, %v1044_v26  ;;  %v1054_v50 = vadd.f32 1e-12, %v1044_v26 }
 0x248   :  { %2114 = vrcp.f32 %v1046_v28 }
 0x249   :  { %2116 = vrsqrt.f32 %v1053_v27 }
 0x24a   :  { %2118 = vrsqrt.f32 %v1054_v50 }
 0x250   :  { %v2113_v29 = vpop.eup %2112 }
 0x251   :  { %v1049_v30 = vmul.f32 %v2113_v29, %v1041_v24 }
 0x252   :  { %v2115_v31 = vpop.eup %2114 }
 0x253   :  { %v1051_v32 = vmul.f32 %v1049_v30, %v1021_v51  ;;  %v1050_v33 = vmul.f32 %v2115_v31, %v1044_v26  ;;  %v2117_v34 = vpop.eup %2116 }
 0x254   :  { %v2119_v37 = vpop.eup %2118 }
 0x255   :  { %v1057_v35 = vmul.f32 %v2117_v34, %v1051_v32  ;;  %v1052_v36 = vmul.f32 %v1050_v33, %v1036_v19 }
 0x257   :  { %v1058_v41 = vmul.f32 %v2119_v37, %v1052_v36  ;;  %v1059_v42 = vmul.f32 %v1057_v35, %v2520_v38  ;;  %v1061_v53 = vmul.f32 %v1057_v35, %v2523_v39  ;;  %v1063_v46 = vmul.f32 %v1057_v35, %v2528_v43 }
 0x258   :  { %v1065_v59 = vmul.f32 %v1057_v35, %v2542_v55  ;;  %v1067_v2 = vmul.f32 %v1057_v35, %v2551_v58  ;;  %v1069_v10 = vmul.f32 %v1057_v35, %v2566_v4  ;;  %v1071_v15 = vmul.f32 %v1057_v35, %v2604_v40 }
 0x259   :  { %v1075_v44 = vsel %vm1006_vm3, %v1059_v42, 0.0  ;;  %v1081_v45 = vsel %vm1006_vm3, %v1061_v53, 0.0  ;;  %v1060_v47 = vmul.f32 %v1058_v41, %v2535_v52  ;;  %v1087_v48 = vsel %vm1006_vm3, %v1063_v46, 0.0 }
 0x25a   :  { %1076 = vadd.xlane.f32.xlu0 %v1075_v44  ;;  %1082 = vadd.xlane.f32.xlu1 %v1081_v45  ;;  %v1062_v60 = vmul.f32 %v1058_v41, %v2539_v54  ;;  %v1093_v62 = vsel %vm1006_vm3, %v1065_v59, 0.0  ;;  %v1064_v3 = vmul.f32 %v1058_v41, %v2548_v49  ;;  %v1099_v5 = vsel %vm1006_vm3, %v1067_v2, 0.0 }
 0x25b   :  { %v1078_v56 = vsel %vm1006_vm3, %v1060_v47, 0.0  ;;  %v1066_v11 = vmul.f32 %v1058_v41, %v2559_v0  ;;  %v1105_v12 = vsel %vm1006_vm3, %v1069_v10, 0.0  ;;  %v1068_v51 = vmul.f32 %v1058_v41, %v2573_v7 }
 0x25c   :  { %v1084_v63 = vsel %vm1006_vm3, %v1062_v60, 0.0  ;;  %v1090_v6 = vsel %vm1006_vm3, %v1064_v3, 0.0  ;;  %v1111_v16 = vsel %vm1006_vm3, %v1071_v15, 0.0  ;;  %v1073_v18 = vmul.f32 %v1057_v35, %v2619_v61 }
 0x25d   :  { %v1096_v14 = vsel %vm1006_vm3, %v1066_v11, 0.0  ;;  %v1102_v17 = vsel %vm1006_vm3, %v1068_v51, 0.0  ;;  %v1070_v19 = vmul.f32 %v1058_v41, %v2592_v23  ;;  %v1072_v22 = vmul.f32 %v1058_v41, %v2616_v57 }
 0x25e   :  { %1088 = vadd.xlane.f32.xlu1 %v1087_v48  ;;  %1079 = vadd.xlane.f32.xlu0 %v1078_v56  ;;  %v1117_v20 = vsel %vm1006_vm3, %v1073_v18, 0.0  ;;  %v1074_v25 = vmul.f32 %v1058_v41, %v2629_v8 }
 0x25f   :  { %v1108_v21 = vsel %vm1006_vm3, %v1070_v19, 0.0  ;;  %v1114_v24 = vsel %vm1006_vm3, %v1072_v22, 0.0 }
 0x260   :  { %v1120_v26 = vsel %vm1006_vm3, %v1074_v25, 0.0 }
 0x262   :  { %1094 = vadd.xlane.f32.xlu1 %v1093_v62  ;;  %1085 = vadd.xlane.f32.xlu0 %v1084_v63 }
 0x266   :  { %1100 = vadd.xlane.f32.xlu1 %v1099_v5  ;;  %1091 = vadd.xlane.f32.xlu0 %v1090_v6 }
 0x26a   :  { %1106 = vadd.xlane.f32.xlu1 %v1105_v12  ;;  %1097 = vadd.xlane.f32.xlu0 %v1096_v14 }
 0x26e   :  { %1112 = vadd.xlane.f32.xlu1 %v1111_v16  ;;  %1103 = vadd.xlane.f32.xlu0 %v1102_v17 }
 0x272   :  { %1118 = vadd.xlane.f32.xlu1 %v1117_v20  ;;  %1109 = vadd.xlane.f32.xlu0 %v1108_v21 }
 0x276   :  { %1115 = vadd.xlane.f32.xlu0 %v1114_v24 }
 0x27a   :  { %1121 = vadd.xlane.f32.xlu0 %v1120_v26 }
 0x2e7   :  { %v2670_v27 = vpop.xlane.xlu0 %1076  ;;  %v2672_v28 = vpop.xlane.xlu1 %1082 }
 0x2e8   :  { %3192 = vst [vmem:[#allocation20_spill] sm:$0xff] %v2670_v27  ;;  %3193 = vst [vmem:[#allocation21_spill] sm:$0xff] %v2672_v28  ;;  %v1139_v50 = vsel %vm981_vm2, %v2670_v27, -inf  ;;  %v1153_v29 = vsel %vm981_vm2, %v2672_v28, -inf }
 0x2e9   :  { %v1140_v30 = vrot.slane %v1139_v50, 4  ;;  %v1154_v31 = vrot.slane %v1153_v29, 4 }
 0x2eb   :  { %v1141_v32 = vmax.f32 %v1139_v50, %v1140_v30  ;;  %v1155_v33 = vmax.f32 %v1153_v29, %v1154_v31  ;;  %v2678_v34 = vpop.xlane.xlu0 %1079  ;;  %v2680_v35 = vpop.xlane.xlu1 %1088 }
 0x2ec   :  { %3194 = vst [vmem:[#allocation22_spill] sm:$0xff] %v2678_v34  ;;  %3195 = vst [vmem:[#allocation23_spill] sm:$0xff] %v2680_v35  ;;  %v1146_v36 = vsel %vm981_vm2, %v2678_v34, -inf  ;;  %v1167_v37 = vsel %vm981_vm2, %v2680_v35, -inf }
 0x2ed   :  { %v1142_v41 = vrot.slane %v1141_v32, 2  ;;  %v1156_v42 = vrot.slane %v1155_v33, 2  ;;  %v1147_v53 = vrot.slane %v1146_v36, 4  ;;  %v1168_v44 = vrot.slane %v1167_v37, 4 }
 0x2ef   :  { %v1143_v45 = vmax.f32 %v1141_v32, %v1142_v41  ;;  %v1157_v46 = vmax.f32 %v1155_v33, %v1156_v42  ;;  %v1148_v47 = vmax.f32 %v1146_v36, %v1147_v53  ;;  %v1169_v48 = vmax.f32 %v1167_v37, %v1168_v44  ;;  %v2686_v56 = vpop.xlane.xlu0 %1085  ;;  %v2688_v59 = vpop.xlane.xlu1 %1094 }
 0x2f0   :  { %3196 = vst [vmem:[#allocation24_spill] sm:$0xff] %v2686_v56  ;;  %3197 = vst [vmem:[#allocation25_spill] sm:$0xff] %v2688_v59  ;;  %v1160_v60 = vsel %vm981_vm2, %v2686_v56, -inf  ;;  %v1181_v62 = vsel %vm981_vm2, %v2688_v59, -inf }
 0x2f1   :  { %v1144_v63 = vrot.slane %v1143_v45, 1  ;;  %v1158_v2 = vrot.slane %v1157_v46, 1  ;;  %v1149_v3 = vrot.slane %v1148_v47, 2  ;;  %v1170_v5 = vrot.slane %v1169_v48, 2 }
 0x2f2   :  { %v1161_v6 = vrot.slane %v1160_v60, 4  ;;  %v1182_v10 = vrot.slane %v1181_v62, 4 }
 0x2f3   :  { %v1145_v11 = vmax.f32 %v1143_v45, %v1144_v63  ;;  %v1159_v12 = vmax.f32 %v1157_v46, %v1158_v2  ;;  %v1150_v14 = vmax.f32 %v1148_v47, %v1149_v3  ;;  %v1171_v15 = vmax.f32 %v1169_v48, %v1170_v5  ;;  %v2694_v51 = vpop.xlane.xlu0 %1091  ;;  %v2696_v16 = vpop.xlane.xlu1 %1100 }
 0x2f4   :  { %3198 = vst [vmem:[#allocation26_spill] sm:$0xff] %v2694_v51  ;;  %3199 = vst [vmem:[#allocation27_spill] sm:$0xff] %v2696_v16  ;;  %v1162_v17 = vmax.f32 %v1160_v60, %v1161_v6  ;;  %v1183_v18 = vmax.f32 %v1181_v62, %v1182_v10  ;;  %v1174_v19 = vsel %vm981_vm2, %v2694_v51, -inf  ;;  %v1195_v20 = vsel %vm981_vm2, %v2696_v16, -inf }
 0x2f5   :  { %v1251_v21 = vsub.f32 %v2670_v27, %v1145_v11  ;;  %v1253_v22 = vsub.f32 %v2672_v28, %v1159_v12  ;;  %v1151_v24 = vrot.slane %v1150_v14, 1  ;;  %v1172_v25 = vrot.slane %v1171_v15, 1 }
 0x2f6   :  { %v1163_v26 = vrot.slane %v1162_v17, 2  ;;  %v1184_v50 = vrot.slane %v1183_v18, 2  ;;  %v1175_v29 = vrot.slane %v1174_v19, 4  ;;  %v1196_v30 = vrot.slane %v1195_v20, 4 }
 0x2f7   :  { %v1267_v31 = vmul.f32 1.442695, %v1251_v21  ;;  %v2704_v32 = vpop.xlane.xlu0 %1097  ;;  %v1271_v33 = vmul.f32 1.442695, %v1253_v22  ;;  %v1152_v36 = vmax.f32 %v1150_v14, %v1151_v24  ;;  %v2706_v42 = vpop.xlane.xlu1 %1106  ;;  %v1173_v45 = vmax.f32 %v1171_v15, %v1172_v25 }
 0x2f8   :  { %3200 = vst [vmem:[#allocation28_spill] sm:$0xff] %v2704_v32  ;;  %v1176_v37 = vmax.f32 %v1174_v19, %v1175_v29  ;;  %v1197_v41 = vmax.f32 %v1195_v20, %v1196_v30  ;;  %3201 = vst [vmem:[#allocation29_spill] sm:$0xff] %v2706_v42  ;;  %v1185_v53 = vmax.f32 %v1183_v18, %v1184_v50  ;;  %v1188_v44 = vsel %vm981_vm2, %v2704_v32, -inf }
 0x2f9   :  { %v1164_v46 = vmax.f32 %v1162_v17, %v1163_v26  ;;  %2120 = vpow2.f32 %v1267_v31  ;;  %v1189_v60 = vrot.slane %v1188_v44, 4  ;;  %v1252_v62 = vsub.f32 %v2678_v34, %v1152_v36 }
 0x2fa   :  { %v1177_v47 = vrot.slane %v1176_v37, 2  ;;  %v1198_v48 = vrot.slane %v1197_v41, 2  ;;  %2122 = vpow2.f32 %v1271_v33  ;;  %v1209_v63 = vsel %vm981_vm2, %v2706_v42, -inf }
 0x2fb   :  { %v2713_v2 = vpop.xlane.xlu0 %1103  ;;  %v1186_v3 = vrot.slane %v1185_v53, 1  ;;  %v1190_v6 = vmax.f32 %v1188_v44, %v1189_v60  ;;  %v1210_v10 = vrot.slane %v1209_v63, 4  ;;  %v1255_v11 = vsub.f32 %v2680_v35, %v1173_v45  ;;  %v2716_v15 = vpop.xlane.xlu1 %1112 }
 0x2fc   :  { %3202 = vst [vmem:[#allocation30_spill] sm:$0xff] %v2713_v2  ;;  %v1199_v5 = vmax.f32 %v1197_v41, %v1198_v48  ;;  %v1165_v12 = vrot.slane %v1164_v46, 1  ;;  %v1178_v14 = vmax.f32 %v1176_v37, %v1177_v47  ;;  %3203 = vst [vmem:[#allocation31_spill] sm:$0xff] %v2716_v15  ;;  %v1202_v20 = vsel %vm981_vm2, %v2713_v2, -inf }
 0x2fd   :  { %v1191_v18 = vrot.slane %v1190_v6, 2  ;;  %v1211_v19 = vmax.f32 %v1209_v63, %v1210_v10  ;;  %v1269_v21 = vmul.f32 1.442695, %v1252_v62  ;;  %v1203_v22 = vrot.slane %v1202_v20, 4 }
 0x2fe   :  { %v1200_v17 = vrot.slane %v1199_v5, 1  ;;  %v1187_v24 = vmax.f32 %v1185_v53, %v1186_v3  ;;  %v1223_v50 = vsel %vm981_vm2, %v2716_v15, -inf  ;;  %v1179_v29 = vrot.slane %v1178_v14, 1 }
 0x2ff   :  { %v1192_v25 = vmax.f32 %v1190_v6, %v1191_v18  ;;  %v1212_v26 = vrot.slane %v1211_v19, 2  ;;  %v1204_v31 = vmax.f32 %v1202_v20, %v1203_v22  ;;  %v1224_v33 = vrot.slane %v1223_v50, 4 }
 0x300   :  { %v1201_v30 = vmax.f32 %v1199_v5, %v1200_v17  ;;  %v1275_v36 = vmul.f32 1.442695, %v1255_v11  ;;  %v1166_v37 = vmax.f32 %v1164_v46, %v1165_v12  ;;  %2124 = vpow2.f32 %v1269_v21 }
 0x301   :  { %v1213_v41 = vmax.f32 %v1211_v19, %v1212_v26  ;;  %v1205_v44 = vrot.slane %v1204_v31, 2  ;;  %v1257_v47 = vsub.f32 %v2688_v59, %v1187_v24  ;;  %v1193_v48 = vrot.slane %v1192_v25, 1 }
 0x302   :  { %v1225_v53 = vmax.f32 %v1223_v50, %v1224_v33  ;;  %v1180_v62 = vmax.f32 %v1178_v14, %v1179_v29  ;;  %v1259_v63 = vsub.f32 %v2696_v16, %v1201_v30  ;;  %2126 = vpow2.f32 %v1275_v36 }
 0x303   :  { %v2722_v45 = vpop.eup %2120  ;;  %v1214_v3 = vrot.slane %v1213_v41, 1  ;;  %v1206_v5 = vmax.f32 %v1204_v31, %v1205_v44  ;;  %v1254_v6 = vsub.f32 %v2686_v56, %v1166_v37  ;;  %v1279_v17 = vmul.f32 1.442695, %v1257_v47 }
 0x304   :  { %v2725_v60 = vpop.eup %2122  ;;  %v1299_v46 = vsel %vm981_vm2, %v2722_v45, 0.0  ;;  %v1194_v18 = vmax.f32 %v1192_v25, %v1193_v48  ;;  %v1226_v19 = vrot.slane %v1225_v53, 2  ;;  %v1256_v14 = vsub.f32 %v2694_v51, %v1180_v62 }
 0x305   :  { %v1215_v10 = vmax.f32 %v1213_v41, %v1214_v3  ;;  %v1207_v11 = vrot.slane %v1206_v5, 1  ;;  %v1313_v12 = vsel %vm981_vm2, %v2725_v60, 0.0  ;;  %v1283_v20 = vmul.f32 1.442695, %v1259_v63  ;;  %v2743_v63 = vpop.xlane.xlu0 %1109 }
 0x306   :  { %v1300_v21 = vrot.slane %v1299_v46, 4  ;;  %v1273_v22 = vmul.f32 1.442695, %v1254_v6  ;;  %v1314_v26 = vrot.slane %v1313_v12, 4  ;;  %2128 = vpow2.f32 %v1279_v17  ;;  %3204 = vst [vmem:[#allocation32_spill] sm:$0xff] %v2743_v63 }
 0x307   :  { %v1261_v24 = vsub.f32 %v2706_v42, %v1215_v10  ;;  %v1208_v50 = vmax.f32 %v1206_v5, %v1207_v11  ;;  %v1258_v29 = vsub.f32 %v2704_v32, %v1194_v18  ;;  %v1227_v30 = vmax.f32 %v1225_v53, %v1226_v19 }
 0x308   :  { %v1277_v33 = vmul.f32 1.442695, %v1256_v14  ;;  %2130 = vpow2.f32 %v1283_v20  ;;  %v1301_v36 = vadd.f32 %v1300_v21, %v1299_v46  ;;  %v1315_v37 = vadd.f32 %v1314_v26, %v1313_v12  ;;  %v2752_v14 = vpop.xlane.xlu1 %1118 }
 0x309   :  { %2132 = vpow2.f32 %v1273_v22  ;;  %v1287_v25 = vmul.f32 1.442695, %v1261_v24  ;;  %v1260_v41 = vsub.f32 %v2713_v2, %v1208_v50  ;;  %v1281_v48 = vmul.f32 1.442695, %v1258_v29 }
 0x30a   :  { %v2736_v31 = vpop.eup %2124  ;;  %v1228_v62 = vrot.slane %v1227_v30, 1  ;;  %2134 = vpow2.f32 %v1277_v33  ;;  %v1302_v53 = vrot.slane %v1301_v36, 2  ;;  %v1316_v3 = vrot.slane %v1315_v37, 2 }
 0x30b   :  { %v1306_v47 = vsel %vm981_vm2, %v2736_v31, 0.0  ;;  %2136 = vpow2.f32 %v1287_v25  ;;  %v1285_v46 = vmul.f32 1.442695, %v1260_v41  ;;  %v1216_v11 = vsel %vm981_vm2, %v2743_v63, -inf }
 0x30c   :  { %v2739_v44 = vpop.eup %2126  ;;  %v1307_v5 = vrot.slane %v1306_v47, 4  ;;  %2138 = vpow2.f32 %v1281_v48  ;;  %v1229_v10 = vmax.f32 %v1227_v30, %v1228_v62  ;;  %v1217_v19 = vrot.slane %v1216_v11, 4  ;;  %v2764_v62 = vpop.xlane.xlu0 %1115 }
 0x30d   :  { %v1327_v6 = vsel %vm981_vm2, %v2739_v44, 0.0  ;;  %v1303_v21 = vadd.f32 %v1302_v53, %v1301_v36  ;;  %v1317_v22 = vadd.f32 %v1316_v3, %v1315_v37  ;;  %2140 = vpow2.f32 %v1285_v46 }
 0x30e   :  { %v1328_v17 = vrot.slane %v1327_v6, 4  ;;  %v1263_v18 = vsub.f32 %v2716_v15, %v1229_v10  ;;  %v1308_v24 = vadd.f32 %v1307_v5, %v1306_v47  ;;  %v1218_v29 = vmax.f32 %v1216_v11, %v1217_v19 }
 0x30f   :  { %v1237_v33 = vsel %vm981_vm2, %v2752_v14, -inf  ;;  %v1304_v37 = vrot.slane %v1303_v21, 1  ;;  %v1318_v47 = vrot.slane %v1317_v22, 1 }
 0x310   :  { %v2749_v12 = vpop.eup %2128  ;;  %v1291_v50 = vmul.f32 1.442695, %v1263_v18  ;;  %v1329_v25 = vadd.f32 %v1328_v17, %v1327_v6  ;;  %v1219_v48 = vrot.slane %v1218_v29, 2  ;;  %v1309_v53 = vrot.slane %v1308_v24, 2  ;;  %v2782_v32 = vpop.xlane.xlu0 %1121 }
 0x311   :  { %v1341_v30 = vsel %vm981_vm2, %v2749_v12, 0.0  ;;  %v1238_v6 = vrot.slane %v1237_v33, 4  ;;  %v1305_v13 = vadd.f32 %v1304_v37, %v1303_v21  ;;  %v2780_v42 = vadd.f32 %v1318_v47, %v1317_v22 }
 0x312   :  { %v2754_v20 = vpop.eup %2130  ;;  %v1342_v46 = vrot.slane %v1341_v30, 4  ;;  %2142 = vpow2.f32 %v1291_v50  ;;  %v1220_v10 = vmax.f32 %v1218_v29, %v1219_v48  ;;  %v1330_v18 = vrot.slane %v1329_v25, 2 }
 0x313   :  { %v2756_v26 = vpop.eup %2132  ;;  %v1355_v41 = vsel %vm981_vm2, %v2754_v20, 0.0  ;;  %v2776_v9 = vadd.f32 %v1309_v53, %v1308_v24  ;;  %v1239_v48 = vmax.f32 %v1237_v33, %v1238_v6  ;;  %v1230_v24 = vsel %vm981_vm2, %v2764_v62, -inf }
 0x314   :  { %v2766_v36 = vpop.eup %2134  ;;  %v1320_v3 = vsel %vm981_vm2, %v2756_v26, 0.0  ;;  %v1356_v11 = vrot.slane %v1355_v41, 4  ;;  %v1221_v1 = vrot.slane %v1220_v10, 1  ;;  %v1343_v50 = vadd.f32 %v1342_v46, %v1341_v30 }
 0x315   :  { %v2770_v5 = vpop.eup %2136  ;;  %v1334_v19 = vsel %vm981_vm2, %v2766_v36, 0.0  ;;  %v1321_v15 = vrot.slane %v1320_v3, 4  ;;  %v1240_v22 = vrot.slane %v1239_v48, 2  ;;  %v1231_v47 = vrot.slane %v1230_v24, 4 }
 0x316   :  { %v2772_v17 = vpop.eup %2138  ;;  %v1369_v2 = vsel %vm981_vm2, %v2770_v5, 0.0  ;;  %v1222_v29 = vmax.f32 %v1220_v10, %v1221_v1  ;;  %v1335_v51 = vrot.slane %v1334_v19, 4  ;;  %v1357_v59 = vadd.f32 %v1356_v11, %v1355_v41 }
 0x317   :  { %v2784_v16 = vpop.eup %2140  ;;  %v1348_v21 = vsel %vm981_vm2, %v2772_v17, 0.0  ;;  %v1370_v37 = vrot.slane %v1369_v2, 4  ;;  %2144 = vrcp.f32 %v1305_v13  ;;  %v1331_v1 = vadd.f32 %v1330_v18, %v1329_v25 }
 0x318   :  { %v1262_v53 = vsub.f32 %v2743_v63, %v1222_v29  ;;  %v1322_v30 = vadd.f32 %v1321_v15, %v1320_v3  ;;  %v1244_v33 = vsel %vm981_vm2, %v2782_v32, -inf  ;;  %v1344_v46 = vrot.slane %v1343_v50, 2 }
 0x319   :  { %v1362_v41 = vsel %vm981_vm2, %v2784_v16, 0.0  ;;  %v1241_v6 = vmax.f32 %v1239_v48, %v1240_v22  ;;  %v1336_v11 = vadd.f32 %v1335_v51, %v1334_v19  ;;  %v1349_v56 = vrot.slane %v1348_v21, 4 }
 0x31a   :  { %v1289_v10 = vmul.f32 1.442695, %v1262_v53  ;;  %v1232_v35 = vmax.f32 %v1230_v24, %v1231_v47  ;;  %v1245_v34 = vrot.slane %v1244_v33, 4  ;;  %v1358_v29 = vrot.slane %v1357_v59, 2 }
 0x31b   :  { %v1371_v63 = vadd.f32 %v1370_v37, %v1369_v2  ;;  %v1242_v13 = vrot.slane %v1241_v6, 1  ;;  %v1363_v15 = vrot.slane %v1362_v41, 4  ;;  %v1323_v27 = vrot.slane %v1322_v30, 2 }
 0x31c   :  { %v2795_v28 = vpop.eup %2142  ;;  %2146 = vpow2.f32 %v1289_v10  ;;  %v1233_v3 = vrot.slane %v1232_v35, 2  ;;  %v1246_v18 = vmax.f32 %v1244_v33, %v1245_v34  ;;  %v1345_v8 = vadd.f32 %v1344_v46, %v1343_v50 }
 0x31d   :  { %v1383_v25 = vsel %vm981_vm2, %v2795_v28, 0.0  ;;  %v1243_v48 = vmax.f32 %v1241_v6, %v1242_v13  ;;  %v1332_v51 = vrot.slane %v1331_v1, 1  ;;  %v1350_v19 = vadd.f32 %v1349_v56, %v1348_v21 }
 0x31e   :  { %v1384_v53 = vrot.slane %v1383_v25, 4  ;;  %v1234_v24 = vmax.f32 %v1232_v35, %v1233_v3  ;;  %v1247_v22 = vrot.slane %v1246_v18, 2  ;;  %v1337_v47 = vrot.slane %v1336_v11, 2 }
 0x31f   :  { %v1372_v57 = vrot.slane %v1371_v63, 2  ;;  %v1265_v2 = vsub.f32 %v2752_v14, %v1243_v48  ;;  %v1359_v37 = vadd.f32 %v1358_v29, %v1357_v59  ;;  %v1364_v10 = vadd.f32 %v1363_v15, %v1362_v41 }
 0x320   :  { %v1385_v61 = vadd.f32 %v1384_v53, %v1383_v25  ;;  %v1235_v23 = vrot.slane %v1234_v24, 1  ;;  %v1248_v7 = vmax.f32 %v1246_v18, %v1247_v22  ;;  %v1324_v0 = vadd.f32 %v1323_v27, %v1322_v30 }
 0x321   :  { %v1346_v40 = vrot.slane %v1345_v8, 1  ;;  %v1295_v33 = vmul.f32 1.442695, %v1265_v2  ;;  %v2145_v50 = vpop.eup %2144  ;;  %v1311_v46 = vrot.slane %v2776_v9, 1  ;;  %v1351_v6 = vrot.slane %v1350_v19, 2 }
 0x322   :  { %v1386_v34 = vrot.slane %v1385_v61, 2  ;;  %v1236_v56 = vmax.f32 %v1234_v24, %v1235_v23  ;;  %v1249_v35 = vrot.slane %v1248_v7, 1  ;;  %v1333_v21 = vadd.f32 %v1332_v51, %v1331_v1 }
 0x323   :  { %v1338_v13 = vadd.f32 %v1337_v47, %v1336_v11  ;;  %v1373_v3 = vadd.f32 %v1372_v57, %v1371_v63  ;;  %2148 = vpow2.f32 %v1295_v33  ;;  %v1360_v25 = vrot.slane %v1359_v37, 1 }
 0x324   :  { %v1365_v53 = vrot.slane %v1364_v10, 2  ;;  %v1264_v59 = vsub.f32 %v2764_v62, %v1236_v56  ;;  %v1250_v41 = vmax.f32 %v1248_v7, %v1249_v35  ;;  %2150 = vrcp.f32 %v2780_v42 }
 0x325   :  { %v1325_v27 = vrot.slane %v1324_v0, 1  ;;  %v1347_v30 = vadd.f32 %v1346_v40, %v1345_v8  ;;  %v1387_v15 = vadd.f32 %v1386_v34, %v1385_v61  ;;  %v1352_v18 = vadd.f32 %v1351_v6, %v1350_v19 }
 0x326   :  { %v2802_v29 = vpop.eup %2146  ;;  %v1293_v1 = vmul.f32 1.442695, %v1264_v59  ;;  %v1266_v57 = vsub.f32 %v2782_v32, %v1250_v41  ;;  %2152 = vrcp.f32 %v1333_v21  ;;  %v1339_v63 = vrot.slane %v1338_v13, 1 }
 0x327   :  { %v1376_v23 = vsel %vm981_vm2, %v2802_v29, 0.0  ;;  %v1374_v11 = vrot.slane %v1373_v3, 1  ;;  %v1361_v51 = vadd.f32 %v1360_v25, %v1359_v37  ;;  %v1366_v7 = vadd.f32 %v1365_v53, %v1364_v10 }
 0x328   :  { %v1377_v48 = vrot.slane %v1376_v23, 4  ;;  %2154 = vpow2.f32 %v1293_v1  ;;  %v1297_v24 = vmul.f32 1.442695, %v1266_v57  ;;  %v1312_v42 = vadd.f32 %v1311_v46, %v2776_v9 }
 0x329   :  { %2156 = vrcp.f32 %v1347_v30  ;;  %v1388_v40 = vrot.slane %v1387_v15, 1  ;;  %v1326_v8 = vadd.f32 %v1325_v27, %v1324_v0  ;;  %v1353_v19 = vrot.slane %v1352_v18, 1 }
 0x32a   :  { %v1378_v61 = vadd.f32 %v1377_v48, %v1376_v23  ;;  %2158 = vpow2.f32 %v1297_v24  ;;  %v1375_v22 = vadd.f32 %v1374_v11, %v1373_v3  ;;  %v1340_v2 = vadd.f32 %v1339_v63, %v1338_v13 }
 0x32b   :  { %2160 = vrcp.f32 %v1361_v51  ;;  %v1367_v34 = vrot.slane %v1366_v7, 1  ;;  %v1389_v37 = vadd.f32 %v1388_v40, %v1387_v15  ;;  %v1354_v6 = vadd.f32 %v1353_v19, %v1352_v18 }
 0x32c   :  { %v1379_v47 = vrot.slane %v1378_v61, 2  ;;  %2162 = vrcp.f32 %v1312_v42  ;;  %v1427_v59 = vmul.f32 %v2145_v50, %v2722_v45 }
 0x32d   :  { %v2809_v33 = vpop.eup %2148  ;;  %2164 = vrcp.f32 %v1326_v8  ;;  %v1368_v35 = vadd.f32 %v1367_v34, %v1366_v7 }
 0x32e   :  { %v1380_v10 = vadd.f32 %v1379_v47, %v1378_v61  ;;  %v1397_v9 = vsel %vm981_vm2, %v2809_v33, 0.0  ;;  %v2151_v46 = vpop.eup %2150  ;;  %2166 = vrcp.f32 %v1375_v22  ;;  %v1443_v48 = vmul.f32 %v1427_v59, %v2520_v38 }
 0x32f   :  { %v1398_v56 = vrot.slane %v1397_v9, 4  ;;  %2168 = vrcp.f32 %v1340_v2  ;;  %v1429_v15 = vmul.f32 %v2151_v46, %v2725_v60 }
 0x330   :  { %v1381_v0 = vrot.slane %v1380_v10, 1  ;;  %v2153_v21 = vpop.eup %2152  ;;  %2170 = vrcp.f32 %v1389_v37 }
 0x331   :  { %v1399_v13 = vadd.f32 %v1398_v56, %v1397_v9  ;;  %2172 = vrcp.f32 %v1354_v6  ;;  %v1431_v63 = vmul.f32 %v2153_v21, %v2739_v44  ;;  %v1445_v60 = vmul.f32 %v1429_v15, %v2523_v39 }
 0x332   :  { %v2813_v3 = vpop.eup %2154  ;;  %v1382_v25 = vadd.f32 %v1381_v0, %v1380_v10  ;;  %2174 = vrcp.f32 %v1368_v35  ;;  %v1459_v10 = vsel %vm1006_vm3, %v1443_v48, 0.0  ;;  %v3206_v48 = vld [vmem:[#allocation13_spill] sm:$0xff] }
 0x333   :  { %v2157_v53 = vpop.eup %2156  ;;  %v1400_v41 = vrot.slane %v1399_v13, 2  ;;  %v1390_v27 = vsel %vm981_vm2, %v2813_v3, 0.0  ;;  %v1447_v2 = vmul.f32 %v1431_v63, %v2528_v43  ;;  %v3205_v63 = vld [vmem:[#allocation16_spill] sm:$0xff] }
 0x334   :  { %v2818_v30 = vpop.eup %2158  ;;  %v1391_v18 = vrot.slane %v1390_v27, 4  ;;  %2176 = vrcp.f32 %v1382_v25  ;;  %v1433_v51 = vmul.f32 %v2157_v53, %v2749_v12 }
 0x335   :  { %v1401_v23 = vadd.f32 %v1400_v41, %v1399_v13  ;;  %v1404_v1 = vsel %vm981_vm2, %v2818_v30, 0.0  ;;  %v2161_v57 = vpop.eup %2160  ;;  %v1462_v59 = vsel %vm1006_vm3, %v1447_v2, 0.0 }
 0x336   :  { %v1392_v11 = vadd.f32 %v1391_v18, %v1390_v27  ;;  %v1405_v45 = vrot.slane %v1404_v1, 4  ;;  %v2163_v50 = vpop.eup %2162  ;;  %v1435_v19 = vmul.f32 %v2161_v57, %v2754_v20  ;;  %v1449_v12 = vmul.f32 %v1433_v51, %v2542_v55 }
 0x337   :  { %v1402_v7 = vrot.slane %v1401_v23, 1  ;;  %v2165_v24 = vpop.eup %2164  ;;  %v1460_v20 = vsel %vm1006_vm3, %v1445_v60, 0.0  ;;  %v1428_v56 = vmul.f32 %v2163_v50, %v2736_v31 }
 0x338   :  { %v1393_v42 = vrot.slane %v1392_v11, 2  ;;  %v1406_v40 = vadd.f32 %v1405_v45, %v1404_v1  ;;  %v2167_v61 = vpop.eup %2166  ;;  %v1430_v37 = vmul.f32 %v2165_v24, %v2756_v26  ;;  %v1451_v21 = vmul.f32 %v1435_v19, %v2551_v58 }
 0x339   :  { %v1403_v8 = vadd.f32 %v1402_v7, %v1401_v23  ;;  %v2169_v22 = vpop.eup %2168  ;;  %v1437_v0 = vmul.f32 %v2167_v61, %v2770_v5  ;;  %v1461_v5 = vadd.f32 %v1460_v20, %v1459_v10  ;;  %v1444_v23 = vmul.f32 %v1428_v56, %v2535_v52 }
 0x33a   :  { %v1394_v44 = vadd.f32 %v1393_v42, %v1392_v11  ;;  %v1407_v47 = vrot.slane %v1406_v40, 2  ;;  %v2171_v34 = vpop.eup %2170  ;;  %v1432_v35 = vmul.f32 %v2169_v22, %v2766_v36  ;;  %v1446_v41 = vmul.f32 %v1430_v37, %v2539_v54  ;;  %v3209_v37 = vld [vmem:[#allocation18_spill] sm:$0xff] }
 0x33b   :  { %2178 = vrcp.f32 %v1403_v8  ;;  %v2173_v6 = vpop.eup %2172  ;;  %v1439_v53 = vmul.f32 %v2171_v34, %v2795_v28  ;;  %v1453_v31 = vmul.f32 %v1437_v0, %v2566_v4  ;;  %v1464_v36 = vsel %vm1006_vm3, %v1449_v12, 0.0 }
 0x33c   :  { %v1395_v9 = vrot.slane %v1394_v44, 1  ;;  %v1408_v46 = vadd.f32 %v1407_v47, %v1406_v40  ;;  %v2175_v13 = vpop.eup %2174  ;;  %v1434_v27 = vmul.f32 %v2173_v6, %v2772_v17  ;;  %v1463_v1 = vadd.f32 %v1462_v59, %v1461_v5  ;;  %v3207_v40 = vld [vmem:[#allocation14_spill] sm:$0xff]  ;;  %v3208_v47 = vld [vmem:[#allocation15_spill] sm:$0xff] }
 0x33d   :  { %v1436_v57 = vmul.f32 %v2175_v13, %v2784_v16  ;;  %v1448_v28 = vmul.f32 %v1432_v35, %v2548_v49  ;;  %v1455_v11 = vmul.f32 %v1439_v53, %v3205_v63  ;;  %v1466_v45 = vsel %vm1006_vm3, %v1451_v21, 0.0  ;;  %v3210_v53 = vld [vmem:[#allocation17_spill] sm:$0xff]  ;;  %v3211_v5 = vld [vmem:[#allocation19_spill] sm:$0xff] }
 0x33e   :  { %v1396_v26 = vadd.f32 %v1395_v9, %v1394_v44  ;;  %v1409_v25 = vrot.slane %v1408_v46, 1  ;;  %v2177_v15 = vpop.eup %2176  ;;  %v1465_v17 = vadd.f32 %v1464_v36, %v1463_v1  ;;  %v1450_v51 = vmul.f32 %v1434_v27, %v3206_v48 }
 0x33f   :  { %v1438_v50 = vmul.f32 %v2177_v15, %v2802_v29  ;;  %v1475_v7 = vsel %vm1006_vm3, %v1446_v41, 0.0  ;;  %v1468_v24 = vsel %vm1006_vm3, %v1453_v31, 0.0  ;;  %v1452_v16 = vmul.f32 %v1436_v57, %v3207_v40 }
 0x340   :  { %2180 = vrcp.f32 %v1396_v26  ;;  %v1410_v18 = vadd.f32 %v1409_v25, %v1408_v46  ;;  %v1467_v42 = vadd.f32 %v1466_v45, %v1465_v17  ;;  %v1474_v61 = vsel %vm1006_vm3, %v1444_v23, 0.0 }
 0x341   :  { %v1477_v8 = vsel %vm1006_vm3, %v1448_v28, 0.0  ;;  %v1470_v22 = vsel %vm1006_vm3, %v1455_v11, 0.0  ;;  %v1476_v44 = vadd.f32 %v1475_v7, %v1474_v61  ;;  %v1454_v2 = vmul.f32 %v1438_v50, %v3208_v47 }
 0x342   :  { %2182 = vrcp.f32 %v1410_v18  ;;  %v1469_v29 = vadd.f32 %v1468_v24, %v1467_v42  ;;  %v1479_v34 = vsel %vm1006_vm3, %v1450_v51, 0.0  ;;  %v1481_v9 = vsel %vm1006_vm3, %v1452_v16, 0.0 }
 0x343   :  { %v1478_v10 = vadd.f32 %v1477_v8, %v1476_v44  ;;  %v1483_v35 = vsel %vm1006_vm3, %v1454_v2, 0.0 }
 0x344   :  { %v1471_v6 = vadd.f32 %v1470_v22, %v1469_v29 }
 0x345   :  { %v2179_v60 = vpop.eup %2178  ;;  %v1480_v20 = vadd.f32 %v1479_v34, %v1478_v10 }
 0x346   :  { %v1441_v19 = vmul.f32 %v2179_v60, %v2809_v33 }
 0x347   :  { %v1482_v13 = vadd.f32 %v1481_v9, %v1480_v20 }
 0x348   :  { %v1457_v12 = vmul.f32 %v1441_v19, %v3209_v37 }
 0x349   :  { %v1484_v41 = vadd.f32 %v1483_v35, %v1482_v13 }
 0x34a   :  { %v2181_v46 = vpop.eup %2180  ;;  %v1472_v0 = vsel %vm1006_vm3, %v1457_v12, 0.0 }
 0x34b   :  { %v1473_v56 = vadd.f32 %v1472_v0, %v1471_v6  ;;  %v1440_v33 = vmul.f32 %v2181_v46, %v2813_v3 }
 0x34c   :  { %v2183_v21 = vpop.eup %2182 }
 0x34d   :  { %v1489_v26 = vmul.f32 %v1473_v56, %v1473_v56  ;;  %v1442_v25 = vmul.f32 %v2183_v21, %v2818_v30  ;;  %v1456_v59 = vmul.f32 %v1440_v33, %v3210_v53 }
 0x34f   :  { %v1491_v27 = vsel %vm1006_vm3, %v1489_v26, 0.0  ;;  %v1458_v15 = vmul.f32 %v1442_v25, %v3211_v5  ;;  %v1485_v18 = vsel %vm1006_vm3, %v1456_v59, 0.0 }
 0x350   :  { %1492 = vadd.xlane.f32.xlu1 %v1491_v27  ;;  %v1486_v31 = vadd.f32 %v1485_v18, %v1484_v41 }
 0x351   :  { %v1487_v3 = vsel %vm1006_vm3, %v1458_v15, 0.0 }
 0x352   :  { %v1488_v36 = vadd.f32 %v1487_v3, %v1486_v31 }
 0x354   :  { %v1490_v23 = vmul.f32 %v1488_v36, %v1488_v36 }
 0x356   :  { %v1494_v1 = vsel %vm1006_vm3, %v1490_v23, 0.0 }
 0x357   :  { %1495 = vadd.xlane.f32.xlu0 %v1494_v1 }
 0x3dd   :  { %v1493_v57 = vpop.xlane.xlu1 %1492 }
 0x3de   :  { %v1497_v30 = vadd.f32 1.0, %v1493_v57  ;;  %v1505_v28 = vadd.f32 1e-12, %v1493_v57 }
 0x3e0   :  { %2184 = vrcp.f32 %v1497_v30 }
 0x3e1   :  { %2186 = vrsqrt.f32 %v1505_v28 }
 0x3e4   :  { %v1496_v11 = vpop.xlane.xlu0 %1495 }
 0x3e5   :  { %v1498_v45 = vadd.f32 1.0, %v1496_v11  ;;  %v1506_v17 = vadd.f32 1e-12, %v1496_v11 }
 0x3e7   :  { %2188 = vrcp.f32 %v1498_v45  ;;  %v3212_v45 = vld [vmem:[#allocation20_spill] sm:$0xff] }
 0x3e8   :  { %2190 = vrsqrt.f32 %v1506_v17 }
 0x3ea   :  { %v2185_v50 = vpop.eup %2184 }
 0x3eb   :  { %v1501_v51 = vmul.f32 %v2185_v50, %v1493_v57  ;;  %v2187_v24 = vpop.eup %2186 }
 0x3ed   :  { %v1503_v7 = vmul.f32 %v1501_v51, %v1473_v56 }
 0x3ef   :  { %v1509_v60 = vmul.f32 %v2187_v24, %v1503_v7  ;;  %v3213_v24 = vld [vmem:[#allocation21_spill] sm:$0xff] }
 0x3f1   :  { %v2189_v42 = vpop.eup %2188  ;;  %v1511_v16 = vmul.f32 %v1509_v60, %v2520_v38  ;;  %v1513_v19 = vmul.f32 %v1509_v60, %v2523_v39  ;;  %v1515_v34 = vmul.f32 %v1509_v60, %v2528_v43  ;;  %v1517_v46 = vmul.f32 %v1509_v60, %v2542_v55 }
 0x3f2   :  { %v1502_v61 = vmul.f32 %v2189_v42, %v1496_v11  ;;  %v2191_v44 = vpop.eup %2190  ;;  %v1519_v33 = vmul.f32 %v1509_v60, %v2551_v58  ;;  %v1521_v26 = vmul.f32 %v1509_v60, %v2566_v4  ;;  %v1523_v27 = vmul.f32 %v1509_v60, %v3205_v63 }
 0x3f3   :  { %v1527_v8 = vsel %vm1006_vm3, %v1511_v16, 0.0  ;;  %v1533_v2 = vsel %vm1006_vm3, %v1513_v19, 0.0  ;;  %v1539_v9 = vsel %vm1006_vm3, %v1515_v34, 0.0  ;;  %v1545_v56 = vsel %vm1006_vm3, %v1517_v46, 0.0 }
 0x3f4   :  { %v1504_v22 = vmul.f32 %v1502_v61, %v1488_v36  ;;  %1528 = vadd.xlane.f32.xlu1 %v1527_v8  ;;  %v1551_v13 = vsel %vm1006_vm3, %v1519_v33, 0.0  ;;  %v1557_v41 = vsel %vm1006_vm3, %v1521_v26, 0.0  ;;  %v1563_v31 = vsel %vm1006_vm3, %v1523_v27, 0.0 }
 0x3f5   :  { %v1525_v3 = vmul.f32 %v1509_v60, %v3209_v37 }
 0x3f6   :  { %v1510_v29 = vmul.f32 %v2191_v44, %v1504_v22  ;;  %v3214_v22 = vld [vmem:[#allocation22_spill] sm:$0xff] }
 0x3f7   :  { %v1569_v1 = vsel %vm1006_vm3, %v1525_v3, 0.0 }
 0x3f8   :  { %1534 = vadd.xlane.f32.xlu1 %v1533_v2  ;;  %v1512_v12 = vmul.f32 %v1510_v29, %v2535_v52  ;;  %v1514_v6 = vmul.f32 %v1510_v29, %v2539_v54  ;;  %v1516_v20 = vmul.f32 %v1510_v29, %v2548_v49  ;;  %v1518_v21 = vmul.f32 %v1510_v29, %v3206_v48  ;;  %v3215_v2 = vld [vmem:[#allocation23_spill] sm:$0xff] }
 0x3f9   :  { %v1520_v59 = vmul.f32 %v1510_v29, %v3207_v40  ;;  %v1522_v18 = vmul.f32 %v1510_v29, %v3208_v47  ;;  %v1524_v23 = vmul.f32 %v1510_v29, %v3210_v53  ;;  %v1526_v30 = vmul.f32 %v1510_v29, %v3211_v5 }
 0x3fa   :  { %v1530_v10 = vsel %vm1006_vm3, %v1512_v12, 0.0  ;;  %v1536_v0 = vsel %vm1006_vm3, %v1514_v6, 0.0  ;;  %v1542_v35 = vsel %vm1006_vm3, %v1516_v20, 0.0  ;;  %v1548_v25 = vsel %vm1006_vm3, %v1518_v21, 0.0 }
 0x3fb   :  { %1531 = vadd.xlane.f32.xlu0 %v1530_v10  ;;  %v1554_v15 = vsel %vm1006_vm3, %v1520_v59, 0.0  ;;  %v1560_v36 = vsel %vm1006_vm3, %v1522_v18, 0.0  ;;  %v1566_v57 = vsel %vm1006_vm3, %v1524_v23, 0.0  ;;  %v1572_v28 = vsel %vm1006_vm3, %v1526_v30, 0.0 }
 0x3fc   :  { %1540 = vadd.xlane.f32.xlu1 %v1539_v9 }
 0x3ff   :  { %1537 = vadd.xlane.f32.xlu0 %v1536_v0 }
 0x400   :  { %1546 = vadd.xlane.f32.xlu1 %v1545_v56 }
 0x403   :  { %1543 = vadd.xlane.f32.xlu0 %v1542_v35  ;;  %v3216_v35 = vld [vmem:[#allocation24_spill] sm:$0xff] }
 0x404   :  { %1552 = vadd.xlane.f32.xlu1 %v1551_v13 }
 0x407   :  { %1549 = vadd.xlane.f32.xlu0 %v1548_v25  ;;  %v3217_v25 = vld [vmem:[#allocation25_spill] sm:$0xff] }
 0x408   :  { %1558 = vadd.xlane.f32.xlu1 %v1557_v41 }
 0x40b   :  { %1555 = vadd.xlane.f32.xlu0 %v1554_v15 }
 0x40c   :  { %1564 = vadd.xlane.f32.xlu1 %v1563_v31 }
 0x40f   :  { %1561 = vadd.xlane.f32.xlu0 %v1560_v36 }
 0x410   :  { %1570 = vadd.xlane.f32.xlu1 %v1569_v1 }
 0x413   :  { %1567 = vadd.xlane.f32.xlu0 %v1566_v57 }
 0x417   :  { %1573 = vadd.xlane.f32.xlu0 %v1572_v28 }
 0x481   :  { %v1529_v11 = vpop.xlane.xlu1 %1528 }
 0x482   :  { %v1575_v17 = vadd.f32 %v1529_v11, %v3212_v45 }
 0x484   :  { %v1591_v50 = vsel %vm981_vm2, %v1575_v17, -inf }
 0x485   :  { %v1592_v51 = vrot.slane %v1591_v50, 4  ;;  %v1535_v7 = vpop.xlane.xlu1 %1534 }
 0x486   :  { %v2906_v60 = vadd.f32 %v1535_v7, %v3213_v24  ;;  %v3219_v7 = vld [vmem:[#allocation27_spill] sm:$0xff] }
 0x487   :  { %v1593_v42 = vmax.f32 %v1591_v50, %v1592_v51  ;;  %v3218_v50 = vld [vmem:[#allocation26_spill] sm:$0xff] }
 0x488   :  { %v1605_v16 = vsel %vm981_vm2, %v2906_v60, -inf  ;;  %v1532_v61 = vpop.xlane.xlu0 %1531 }
 0x489   :  { %v1594_v8 = vrot.slane %v1593_v42, 2  ;;  %v1606_v19 = vrot.slane %v1605_v16, 4  ;;  %v2911_v44 = vadd.f32 %v1532_v61, %v3214_v22  ;;  %v1541_v29 = vpop.xlane.xlu1 %1540 }
 0x48a   :  { %v2914_v34 = vadd.f32 %v1541_v29, %v3215_v2 }
 0x48b   :  { %v1595_v12 = vmax.f32 %v1593_v42, %v1594_v8  ;;  %v1607_v10 = vmax.f32 %v1605_v16, %v1606_v19  ;;  %v1598_v6 = vsel %vm981_vm2, %v2911_v44, -inf }
 0x48c   :  { %v1599_v9 = vrot.slane %v1598_v6, 4  ;;  %v1619_v46 = vsel %vm981_vm2, %v2914_v34, -inf  ;;  %v1538_v0 = vpop.xlane.xlu0 %1537 }
 0x48d   :  { %v1596_v20 = vrot.slane %v1595_v12, 1  ;;  %v1608_v56 = vrot.slane %v1607_v10, 2  ;;  %v1620_v33 = vrot.slane %v1619_v46, 4  ;;  %v2921_v21 = vadd.f32 %v1538_v0, %v3216_v35  ;;  %v1547_v13 = vpop.xlane.xlu1 %1546  ;;  %v3220_v0 = vld [vmem:[#allocation28_spill] sm:$0xff] }
 0x48e   :  { %v1600_v26 = vmax.f32 %v1598_v6, %v1599_v9  ;;  %v2924_v59 = vadd.f32 %v1547_v13, %v3217_v25 }
 0x48f   :  { %v1597_v41 = vmax.f32 %v1595_v12, %v1596_v20  ;;  %v1609_v27 = vmax.f32 %v1607_v10, %v1608_v56  ;;  %v1621_v15 = vmax.f32 %v1619_v46, %v1620_v33  ;;  %v1612_v18 = vsel %vm981_vm2, %v2921_v21, -inf }
 0x490   :  { %v1601_v31 = vrot.slane %v1600_v26, 2  ;;  %v1613_v3 = vrot.slane %v1612_v18, 4  ;;  %v1633_v36 = vsel %vm981_vm2, %v2924_v59, -inf  ;;  %v1544_v23 = vpop.xlane.xlu0 %1543 }
 0x491   :  { %v1703_v1 = vsub.f32 %v1575_v17, %v1597_v41  ;;  %v1610_v57 = vrot.slane %v1609_v27, 1  ;;  %v1622_v30 = vrot.slane %v1621_v15, 2  ;;  %v1634_v28 = vrot.slane %v1633_v36, 4  ;;  %v1553_v11 = vpop.xlane.xlu1 %1552 }
 0x492   :  { %v1602_v45 = vmax.f32 %v1600_v26, %v1601_v31  ;;  %v2931_v51 = vadd.f32 %v1544_v23, %v3218_v50  ;;  %v2934_v24 = vadd.f32 %v1553_v11, %v3219_v7  ;;  %v1614_v42 = vmax.f32 %v1612_v18, %v1613_v3  ;;  %v3221_v31 = vld [vmem:[#allocation29_spill] sm:$0xff] }
 0x493   :  { %v1635_v16 = vmax.f32 %v1633_v36, %v1634_v28  ;;  %v1611_v61 = vmax.f32 %v1609_v27, %v1610_v57  ;;  %v1623_v8 = vmax.f32 %v1621_v15, %v1622_v30  ;;  %v1719_v29 = vmul.f32 1.442695, %v1703_v1 }
 0x494   :  { %v1626_v19 = vsel %vm981_vm2, %v2931_v51, -inf  ;;  %v1647_v17 = vsel %vm981_vm2, %v2934_v24, -inf  ;;  %v1550_v22 = vpop.xlane.xlu0 %1549  ;;  %v1603_v2 = vrot.slane %v1602_v45, 1  ;;  %v1615_v46 = vrot.slane %v1614_v42, 2 }
 0x495   :  { %v1636_v12 = vrot.slane %v1635_v16, 2  ;;  %v1627_v10 = vrot.slane %v1626_v19, 4  ;;  %v1648_v6 = vrot.slane %v1647_v17, 4  ;;  %v1559_v9 = vpop.xlane.xlu1 %1558  ;;  %v2941_v20 = vadd.f32 %v1550_v22, %v3220_v0 }
 0x496   :  { %v1705_v56 = vsub.f32 %v2906_v60, %v1611_v61  ;;  %v1624_v33 = vrot.slane %v1623_v8, 1  ;;  %2192 = vpow2.f32 %v1719_v29  ;;  %v1604_v25 = vmax.f32 %v1602_v45, %v1603_v2  ;;  %v3222_v61 = vld [vmem:[#allocation30_spill] sm:$0xff] }
 0x497   :  { %v1649_v35 = vmax.f32 %v1647_v17, %v1648_v6  ;;  %v1628_v13 = vmax.f32 %v1626_v19, %v1627_v10  ;;  %v1640_v26 = vsel %vm981_vm2, %v2941_v20, -inf  ;;  %v1637_v41 = vmax.f32 %v1635_v16, %v1636_v12  ;;  %v3223_v17 = vld [vmem:[#allocation31_spill] sm:$0xff] }
 0x498   :  { %v1616_v15 = vmax.f32 %v1614_v42, %v1615_v46  ;;  %v1641_v18 = vrot.slane %v1640_v26, 4  ;;  %v2947_v3 = vadd.f32 %v1559_v9, %v3221_v31  ;;  %v1723_v36 = vmul.f32 1.442695, %v1705_v56  ;;  %v1556_v1 = vpop.xlane.xlu0 %1555 }
 0x499   :  { %v1650_v27 = vrot.slane %v1649_v35, 2  ;;  %v1625_v23 = vmax.f32 %v1623_v8, %v1624_v33  ;;  %v1565_v57 = vpop.xlane.xlu1 %1564  ;;  %v1629_v60 = vrot.slane %v1628_v13, 2  ;;  %v1704_v50 = vsub.f32 %v2911_v44, %v1604_v25 }
 0x49a   :  { %v1642_v28 = vmax.f32 %v1640_v26, %v1641_v18  ;;  %v1661_v11 = vsel %vm981_vm2, %v2947_v3, -inf  ;;  %v1638_v45 = vrot.slane %v1637_v41, 1  ;;  %v1617_v16 = vrot.slane %v1616_v15, 1 }
 0x49b   :  { %v1651_v30 = vmax.f32 %v1649_v35, %v1650_v27  ;;  %v1662_v7 = vrot.slane %v1661_v11, 4  ;;  %v2953_v19 = vadd.f32 %v1556_v1, %v3222_v61  ;;  %v2956_v22 = vadd.f32 %v1565_v57, %v3223_v17 }
 0x49c   :  { %v1643_v42 = vrot.slane %v1642_v28, 2  ;;  %2194 = vpow2.f32 %v1723_v36  ;;  %v1707_v8 = vsub.f32 %v2914_v34, %v1625_v23  ;;  %v1630_v29 = vmax.f32 %v1628_v13, %v1629_v60 }
 0x49d   :  { %v1652_v2 = vrot.slane %v1651_v30, 1  ;;  %v1663_v12 = vmax.f32 %v1661_v11, %v1662_v7  ;;  %v1721_v10 = vmul.f32 1.442695, %v1704_v50  ;;  %v1639_v6 = vmax.f32 %v1637_v41, %v1638_v45 }
 0x49e   :  { %v1654_v44 = vsel %vm981_vm2, %v2953_v19, -inf  ;;  %v1675_v9 = vsel %vm981_vm2, %v2956_v22, -inf  ;;  %v1618_v46 = vmax.f32 %v1616_v15, %v1617_v16  ;;  %v1644_v0 = vmax.f32 %v1642_v28, %v1643_v42 }
 0x49f   :  { %v1664_v56 = vrot.slane %v1663_v12, 2  ;;  %v1655_v33 = vrot.slane %v1654_v44, 4  ;;  %v1727_v26 = vmul.f32 1.442695, %v1707_v8  ;;  %v1631_v25 = vrot.slane %v1630_v29, 1 }
 0x4a0   :  { %v2963_v35 = vpop.eup %2192  ;;  %v1653_v34 = vmax.f32 %v1651_v30, %v1652_v2  ;;  %v1676_v27 = vrot.slane %v1675_v9, 4  ;;  %2196 = vpow2.f32 %v1721_v10  ;;  %v1709_v41 = vsub.f32 %v2924_v59, %v1639_v6 }
 0x4a1   :  { %v1665_v13 = vmax.f32 %v1663_v12, %v1664_v56  ;;  %v1656_v18 = vmax.f32 %v1654_v44, %v1655_v33  ;;  %v1751_v31 = vsel %vm981_vm2, %v2963_v35, 0.0  ;;  %v1706_v36 = vsub.f32 %v2921_v21, %v1618_v46  ;;  %v1562_v44 = vpop.xlane.xlu0 %1561  ;;  %v3224_v33 = vld [vmem:[#allocation32_spill] sm:$0xff] }
 0x4a2   :  { %v1645_v15 = vrot.slane %v1644_v0, 1  ;;  %2198 = vpow2.f32 %v1727_v26  ;;  %v1632_v1 = vmax.f32 %v1630_v29, %v1631_v25  ;;  %v1711_v57 = vsub.f32 %v2934_v24, %v1653_v34 }
 0x4a3   :  { %v1666_v23 = vrot.slane %v1665_v13, 1  ;;  %v1677_v60 = vmax.f32 %v1675_v9, %v1676_v27  ;;  %v1752_v30 = vrot.slane %v1751_v31, 4  ;;  %v1731_v11 = vmul.f32 1.442695, %v1709_v41 }
 0x4a4   :  { %v1657_v45 = vrot.slane %v1656_v18, 2  ;;  %v1725_v59 = vmul.f32 1.442695, %v1706_v36  ;;  %v1646_v7 = vmax.f32 %v1644_v0, %v1645_v15  ;;  %v1708_v21 = vsub.f32 %v2931_v51, %v1632_v1  ;;  %v1571_v1 = vpop.xlane.xlu1 %1570 }
 0x4a5   :  { %v1667_v50 = vmax.f32 %v1665_v13, %v1666_v23  ;;  %v1735_v42 = vmul.f32 1.442695, %v1711_v57  ;;  %v1678_v61 = vrot.slane %v1677_v60, 2  ;;  %v1753_v17 = vadd.f32 %v1752_v30, %v1751_v31 }
 0x4a6   :  { %v2970_v28 = vpop.eup %2194  ;;  %2200 = vpow2.f32 %v1731_v11  ;;  %v1658_v8 = vmax.f32 %v1656_v18, %v1657_v45  ;;  %v1710_v29 = vsub.f32 %v2941_v20, %v1646_v7  ;;  %v1729_v9 = vmul.f32 1.442695, %v1708_v21 }
 0x4a7   :  { %v1765_v16 = vsel %vm981_vm2, %v2970_v28, 0.0  ;;  %v1713_v24 = vsub.f32 %v2947_v3, %v1667_v50  ;;  %2202 = vpow2.f32 %v1725_v59  ;;  %v1679_v46 = vmax.f32 %v1677_v60, %v1678_v61  ;;  %v1568_v50 = vpop.xlane.xlu0 %1567 }
 0x4a8   :  { %v1766_v12 = vrot.slane %v1765_v16, 4  ;;  %v1659_v6 = vrot.slane %v1658_v8, 1  ;;  %2204 = vpow2.f32 %v1735_v42  ;;  %v1754_v51 = vrot.slane %v1753_v17, 2 }
 0x4a9   :  { %v1739_v10 = vmul.f32 1.442695, %v1713_v24  ;;  %v1733_v3 = vmul.f32 1.442695, %v1710_v29  ;;  %v2984_v26 = vadd.f32 %v1562_v44, %v3224_v33  ;;  %v1680_v34 = vrot.slane %v1679_v46, 1 }
 0x4aa   :  { %v2977_v2 = vpop.eup %2196  ;;  %v1767_v20 = vadd.f32 %v1766_v12, %v1765_v16  ;;  %v1660_v25 = vmax.f32 %v1658_v8, %v1659_v6  ;;  %v1755_v13 = vadd.f32 %v1754_v51, %v1753_v17  ;;  %v3001_v42 = vadd.f32 %v1571_v1, %v2752_v14 }
 0x4ab   :  { %v1758_v56 = vsel %vm981_vm2, %v2977_v2, 0.0  ;;  %2206 = vpow2.f32 %v1739_v10  ;;  %v1681_v31 = vmax.f32 %v1679_v46, %v1680_v34  ;;  %v1668_v36 = vsel %vm981_vm2, %v2984_v26, -inf }
 0x4ac   :  { %v2979_v0 = vpop.eup %2198  ;;  %2208 = vpow2.f32 %v1729_v9  ;;  %v1759_v27 = vrot.slane %v1758_v56, 4  ;;  %v1712_v18 = vsub.f32 %v2953_v19, %v1660_v25  ;;  %v1768_v23 = vrot.slane %v1767_v20, 2 }
 0x4ad   :  { %v1779_v41 = vsel %vm981_vm2, %v2979_v0, 0.0  ;;  %2210 = vpow2.f32 %v1733_v3  ;;  %v1715_v11 = vsub.f32 %v2956_v22, %v1681_v31  ;;  %v1756_v45 = vrot.slane %v1755_v13, 1 }
 0x4ae   :  { %v1780_v60 = vrot.slane %v1779_v41, 4  ;;  %v1737_v30 = vmul.f32 1.442695, %v1712_v18  ;;  %v1760_v59 = vadd.f32 %v1759_v27, %v1758_v56  ;;  %v1669_v7 = vrot.slane %v1668_v36, 4  ;;  %v1574_v56 = vpop.xlane.xlu0 %1573 }
 0x4af   :  { %v1743_v21 = vmul.f32 1.442695, %v1715_v11  ;;  %v3003_v61 = vadd.f32 %v1768_v23, %v1767_v20  ;;  %v1689_v29 = vsel %vm981_vm2, %v3001_v42, -inf  ;;  %v3012_v12 = vadd.f32 %v1568_v50, %v2764_v62 }
 0x4b0   :  { %v2991_v15 = vpop.eup %2200  ;;  %2212 = vpow2.f32 %v1737_v30  ;;  %v1670_v22 = vmax.f32 %v1668_v36, %v1669_v7  ;;  %v1781_v8 = vadd.f32 %v1780_v60, %v1779_v41  ;;  %v3018_v44 = vadd.f32 %v1756_v45, %v1755_v13 }
 0x4b1   :  { %v2993_v57 = vpop.eup %2202  ;;  %v1793_v16 = vsel %vm981_vm2, %v2991_v15, 0.0  ;;  %2214 = vpow2.f32 %v1743_v21  ;;  %v1761_v9 = vrot.slane %v1760_v59, 2  ;;  %v1690_v20 = vrot.slane %v1689_v29, 4 }
 0x4b2   :  { %v2996_v19 = vpop.eup %2204  ;;  %v1772_v17 = vsel %vm981_vm2, %v2993_v57, 0.0  ;;  %v1794_v10 = vrot.slane %v1793_v16, 4  ;;  %v1671_v51 = vrot.slane %v1670_v22, 2  ;;  %v1682_v62 = vsel %vm981_vm2, %v3012_v12, -inf }
 0x4b3   :  { %v1807_v14 = vsel %vm981_vm2, %v2996_v19, 0.0  ;;  %v1773_v46 = vrot.slane %v1772_v17, 4  ;;  %v1782_v34 = vrot.slane %v1781_v8, 2  ;;  %v1683_v13 = vrot.slane %v1682_v62, 4 }
 0x4b4   :  { %v1808_v27 = vrot.slane %v1807_v14, 4  ;;  %v1672_v41 = vmax.f32 %v1670_v22, %v1671_v51  ;;  %v1795_v18 = vadd.f32 %v1794_v10, %v1793_v16  ;;  %v1691_v36 = vmax.f32 %v1689_v29, %v1690_v20 }
 0x4b5   :  { %v3007_v24 = vpop.eup %2206  ;;  %v3030_v23 = vadd.f32 %v1574_v56, %v2782_v32  ;;  %v3032_v1 = vadd.f32 %v1761_v9, %v1760_v59  ;;  %v1684_v11 = vmax.f32 %v1682_v62, %v1683_v13  ;;  %v1774_v50 = vadd.f32 %v1773_v46, %v1772_v17 }
 0x4b6   :  { %v3016_v6 = vpop.eup %2208  ;;  %v1821_v33 = vsel %vm981_vm2, %v3007_v24, 0.0  ;;  %v1673_v30 = vrot.slane %v1672_v41, 1  ;;  %v1692_v7 = vrot.slane %v1691_v36, 2  ;;  %v1809_v29 = vadd.f32 %v1808_v27, %v1807_v14 }
 0x4b7   :  { %v3025_v25 = vpop.eup %2210  ;;  %v1786_v31 = vsel %vm981_vm2, %v3016_v6, 0.0  ;;  %v1822_v60 = vrot.slane %v1821_v33, 4  ;;  %v1696_v16 = vsel %vm981_vm2, %v3030_v23, -inf  ;;  %v1685_v32 = vrot.slane %v1684_v11, 2 }
 0x4b8   :  { %v1800_v45 = vsel %vm981_vm2, %v3025_v25, 0.0  ;;  %v1787_v22 = vrot.slane %v1786_v31, 4  ;;  %v1674_v10 = vmax.f32 %v1672_v41, %v1673_v30  ;;  %v1796_v51 = vrot.slane %v1795_v18, 2 }
 0x4b9   :  { %v1693_v9 = vmax.f32 %v1691_v36, %v1692_v7  ;;  %v1697_v56 = vrot.slane %v1696_v16, 4  ;;  %v1801_v46 = vrot.slane %v1800_v45, 4  ;;  %v1823_v20 = vadd.f32 %v1822_v60, %v1821_v33 }
 0x4ba   :  { %v3038_v21 = vpop.eup %2212  ;;  %v1714_v62 = vsub.f32 %v2984_v26, %v1674_v10  ;;  %v1686_v13 = vmax.f32 %v1684_v11, %v1685_v32  ;;  %v1783_v3 = vadd.f32 %v1782_v34, %v1781_v8  ;;  %v1788_v41 = vadd.f32 %v1787_v22, %v1786_v31 }
 0x4bb   :  { %v1814_v59 = vsel %vm981_vm2, %v3038_v21, 0.0  ;;  %v3042_v17 = vpop.eup %2214  ;;  %v1694_v14 = vrot.slane %v1693_v9, 1  ;;  %v1698_v27 = vmax.f32 %v1696_v16, %v1697_v56  ;;  %v1810_v30 = vrot.slane %v1809_v29, 2 }
 0x4bc   :  { %v1835_v5 = vsel %vm981_vm2, %v3042_v17, 0.0  ;;  %v1815_v53 = vrot.slane %v1814_v59, 4  ;;  %v1775_v37 = vrot.slane %v1774_v50, 2  ;;  %v1741_v36 = vmul.f32 1.442695, %v1714_v62 }
 0x4bd   :  { %v1836_v47 = vrot.slane %v1835_v5, 4  ;;  %v1695_v7 = vmax.f32 %v1693_v9, %v1694_v14  ;;  %v1687_v40 = vrot.slane %v1686_v13, 1  ;;  %v1797_v48 = vadd.f32 %v1796_v51, %v1795_v18 }
 0x4be   :  { %v1802_v63 = vadd.f32 %v1801_v46, %v1800_v45  ;;  %v1824_v33 = vrot.slane %v1823_v20, 2  ;;  %2216 = vpow2.f32 %v1741_v36  ;;  %v1699_v34 = vrot.slane %v1698_v27, 2 }
 0x4bf   :  { %v1837_v60 = vadd.f32 %v1836_v47, %v1835_v5  ;;  %v1717_v26 = vsub.f32 %v3001_v42, %v1695_v7  ;;  %v1688_v8 = vmax.f32 %v1686_v13, %v1687_v40  ;;  %v1784_v11 = vrot.slane %v1783_v3, 1 }
 0x4c0   :  { %v1789_v10 = vrot.slane %v1788_v41, 2  ;;  %v1811_v16 = vadd.f32 %v1810_v30, %v1809_v29  ;;  %v1816_v31 = vadd.f32 %v1815_v53, %v1814_v59  ;;  %v1700_v62 = vmax.f32 %v1698_v27, %v1699_v34 }
 0x4c1   :  { %v1838_v22 = vrot.slane %v1837_v60, 2  ;;  %v1747_v32 = vmul.f32 1.442695, %v1717_v26  ;;  %v1716_v56 = vsub.f32 %v3012_v12, %v1688_v8  ;;  %v3225_v18 = vrot.slane %v3003_v61, 1 }
 0x4c2   :  { %v1776_v51 = vadd.f32 %v1775_v37, %v1774_v50  ;;  %v1798_v47 = vrot.slane %v1797_v48, 1  ;;  %v1803_v5 = vrot.slane %v1802_v63, 2  ;;  %v1825_v9 = vadd.f32 %v1824_v33, %v1823_v20 }
 0x4c3   :  { %v1771_v45 = vadd.f32 %v3225_v18, %v3003_v61  ;;  %2218 = vpow2.f32 %v1747_v32  ;;  %v1745_v40 = vmul.f32 1.442695, %v1716_v56  ;;  %v1701_v42 = vrot.slane %v1700_v62, 1 }
 0x4c4   :  { %v1763_v46 = vrot.slane %v3032_v1, 1  ;;  %v1785_v29 = vadd.f32 %v1784_v11, %v1783_v3  ;;  %v1790_v53 = vadd.f32 %v1789_v10, %v1788_v41  ;;  %v1817_v59 = vrot.slane %v1816_v31, 2 }
 0x4c5   :  { %v1812_v13 = vrot.slane %v1811_v16, 1  ;;  %v1839_v14 = vadd.f32 %v1838_v22, %v1837_v60  ;;  %2220 = vpow2.f32 %v1745_v40  ;;  %v1702_v12 = vmax.f32 %v1700_v62, %v1701_v42 }
 0x4c6   :  { %2222 = vrcp.f32 %v3018_v44  ;;  %v1777_v27 = vrot.slane %v1776_v51, 1  ;;  %v1799_v61 = vadd.f32 %v1798_v47, %v1797_v48  ;;  %v1804_v37 = vadd.f32 %v1803_v5, %v1802_v63 }
 0x4c7   :  { %2224 = vrcp.f32 %v1771_v45  ;;  %v1826_v50 = vrot.slane %v1825_v9, 1  ;;  %v1718_v20 = vsub.f32 %v3030_v23, %v1702_v12  ;;  %v1764_v30 = vadd.f32 %v1763_v46, %v3032_v1 }
 0x4c8   :  { %v1791_v36 = vrot.slane %v1790_v53, 1  ;;  %v1818_v7 = vadd.f32 %v1817_v59, %v1816_v31  ;;  %v3056_v3 = vpop.eup %2216  ;;  %2226 = vrcp.f32 %v1785_v29  ;;  %v1813_v41 = vadd.f32 %v1812_v13, %v1811_v16 }
 0x4c9   :  { %v1840_v33 = vrot.slane %v1839_v14, 1  ;;  %v1749_v60 = vmul.f32 1.442695, %v1718_v20  ;;  %v1778_v26 = vadd.f32 %v1777_v27, %v1776_v51  ;;  %2228 = vrcp.f32 %v1799_v61 }
 0x4ca   :  { %v1828_v48 = vsel %vm981_vm2, %v3056_v3, 0.0  ;;  %v1805_v44 = vrot.slane %v1804_v37, 1  ;;  %v1827_v63 = vadd.f32 %v1826_v50, %v1825_v9  ;;  %v1792_v23 = vadd.f32 %v1791_v36, %v1790_v53 }
 0x4cb   :  { %v1829_v8 = vrot.slane %v1828_v48, 4  ;;  %2230 = vpow2.f32 %v1749_v60  ;;  %v1819_v1 = vrot.slane %v1818_v7, 1  ;;  %v1841_v11 = vadd.f32 %v1840_v33, %v1839_v14 }
 0x4cc   :  { %2232 = vrcp.f32 %v1764_v30  ;;  %v1806_v22 = vadd.f32 %v1805_v44, %v1804_v37 }
 0x4cd   :  { %v3060_v34 = vpop.eup %2218  ;;  %2234 = vrcp.f32 %v1813_v41  ;;  %v1830_v10 = vadd.f32 %v1829_v8, %v1828_v48  ;;  %v1820_v18 = vadd.f32 %v1819_v1, %v1818_v7 }
 0x4ce   :  { %2236 = vrcp.f32 %v1778_v26  ;;  %v1849_v16 = vsel %vm981_vm2, %v3060_v34, 0.0 }
 0x4cf   :  { %v3064_v31 = vpop.eup %2220  ;;  %2238 = vrcp.f32 %v1827_v63  ;;  %v1831_v32 = vrot.slane %v1830_v10, 2  ;;  %v1850_v56 = vrot.slane %v1849_v16, 4 }
 0x4d0   :  { %v2223_v62 = vpop.eup %2222  ;;  %2240 = vrcp.f32 %v1792_v23  ;;  %v1842_v45 = vsel %vm981_vm2, %v3064_v31, 0.0 }
 0x4d1   :  { %v2225_v51 = vpop.eup %2224  ;;  %2242 = vrcp.f32 %v1841_v11  ;;  %v1832_v47 = vadd.f32 %v1831_v32, %v1830_v10  ;;  %v1851_v5 = vadd.f32 %v1850_v56, %v1849_v16  ;;  %v1843_v9 = vrot.slane %v1842_v45, 4 }
 0x4d2   :  { %v2227_v40 = vpop.eup %2226  ;;  %2244 = vrcp.f32 %v1806_v22  ;;  %v1879_v59 = vmul.f32 %v2223_v62, %v2963_v35  ;;  %v1881_v13 = vmul.f32 %v2225_v51, %v2970_v28 }
 0x4d3   :  { %v1833_v42 = vrot.slane %v1832_v47, 1  ;;  %v1852_v46 = vrot.slane %v1851_v5, 2  ;;  %v1844_v29 = vadd.f32 %v1843_v9, %v1842_v45  ;;  %v2229_v53 = vpop.eup %2228  ;;  %2246 = vrcp.f32 %v1820_v18 }
 0x4d4   :  { %v1883_v50 = vmul.f32 %v2227_v40, %v2979_v0  ;;  %v1897_v28 = vmul.f32 %v1881_v13, %v2523_v39  ;;  %v1885_v33 = vmul.f32 %v2229_v53, %v2991_v15  ;;  %v1895_v26 = vmul.f32 %v1879_v59, %v2520_v38  ;;  %v3227_v59 = vld [vmem:[#allocation13_spill] sm:$0xff] }
 0x4d5   :  { %v3070_v14 = vpop.eup %2230  ;;  %v1834_v12 = vadd.f32 %v1833_v42, %v1832_v47  ;;  %v1853_v27 = vadd.f32 %v1852_v46, %v1851_v5  ;;  %v1845_v61 = vrot.slane %v1844_v29, 2  ;;  %v3226_v46 = vld [vmem:[#allocation16_spill] sm:$0xff] }
 0x4d6   :  { %v2233_v37 = vpop.eup %2232  ;;  %v1856_v20 = vsel %vm981_vm2, %v3070_v14, 0.0  ;;  %v1899_v8 = vmul.f32 %v1883_v50, %v2528_v43  ;;  %v1901_v15 = vmul.f32 %v1885_v33, %v2542_v55  ;;  %v1912_v38 = vsel %vm1006_vm3, %v1897_v28, 0.0  ;;  %v3230_v28 = vld [vmem:[#allocation15_spill] sm:$0xff] }
 0x4d7   :  { %v2235_v30 = vpop.eup %2234  ;;  %2248 = vrcp.f32 %v1834_v12  ;;  %v1854_v36 = vrot.slane %v1853_v27, 1  ;;  %v1846_v7 = vadd.f32 %v1845_v61, %v1844_v29  ;;  %v1857_v41 = vrot.slane %v1856_v20, 4 }
 0x4d8   :  { %v2237_v35 = vpop.eup %2236  ;;  %v1887_v23 = vmul.f32 %v2235_v30, %v2996_v19  ;;  %v1880_v32 = vmul.f32 %v2233_v37, %v2977_v2  ;;  %v1911_v43 = vsel %vm1006_vm3, %v1895_v26, 0.0  ;;  %v1916_v5 = vsel %vm1006_vm3, %v1901_v15, 0.0  ;;  %v3228_v37 = vld [vmem:[#allocation14_spill] sm:$0xff] }
 0x4d9   :  { %v2239_v60 = vpop.eup %2238  ;;  %v1855_v48 = vadd.f32 %v1854_v36, %v1853_v27  ;;  %v1847_v44 = vrot.slane %v1846_v7, 1  ;;  %v1858_v63 = vadd.f32 %v1857_v41, %v1856_v20  ;;  %v1882_v16 = vmul.f32 %v2237_v35, %v2993_v57 }
 0x4da   :  { %v2241_v0 = vpop.eup %2240  ;;  %v1889_v39 = vmul.f32 %v2239_v60, %v3007_v24  ;;  %v1903_v18 = vmul.f32 %v1887_v23, %v2551_v58  ;;  %v1914_v57 = vsel %vm1006_vm3, %v1899_v8, 0.0  ;;  %v1913_v55 = vadd.f32 %v1912_v38, %v1911_v43 }
 0x4db   :  { %v2243_v1 = vpop.eup %2242  ;;  %2250 = vrcp.f32 %v1855_v48  ;;  %v1848_v11 = vadd.f32 %v1847_v44, %v1846_v7  ;;  %v1859_v10 = vrot.slane %v1858_v63, 2  ;;  %v1884_v19 = vmul.f32 %v2241_v0, %v3016_v6  ;;  %v3231_v44 = vld [vmem:[#allocation17_spill] sm:$0xff] }
 0x4dc   :  { %v2245_v22 = vpop.eup %2244  ;;  %v1891_v62 = vmul.f32 %v2243_v1, %v3042_v17  ;;  %v1898_v51 = vmul.f32 %v1882_v16, %v2539_v54  ;;  %v1905_v2 = vmul.f32 %v1889_v39, %v2566_v4  ;;  %v1896_v6 = vmul.f32 %v1880_v32, %v2535_v52 }
 0x4dd   :  { %2252 = vrcp.f32 %v1848_v11  ;;  %v1860_v56 = vadd.f32 %v1859_v10, %v1858_v63  ;;  %v2247_v24 = vpop.eup %2246  ;;  %v1886_v47 = vmul.f32 %v2245_v22, %v3025_v25  ;;  %v1915_v17 = vadd.f32 %v1914_v57, %v1913_v55  ;;  %v3232_v22 = vld [vmem:[#allocation19_spill] sm:$0xff] }
 0x4de   :  { %v1900_v58 = vmul.f32 %v1884_v19, %v2548_v49  ;;  %v1888_v42 = vmul.f32 %v2247_v24, %v3038_v21  ;;  %v1907_v29 = vmul.f32 %v1891_v62, %v3226_v46  ;;  %v1918_v53 = vsel %vm1006_vm3, %v1903_v18, 0.0 }
 0x4df   :  { %v1861_v45 = vrot.slane %v1860_v56, 1  ;;  %v1917_v54 = vadd.f32 %v1916_v5, %v1915_v17  ;;  %v1920_v25 = vsel %vm1006_vm3, %v1905_v2, 0.0  ;;  %v1902_v13 = vmul.f32 %v1886_v47, %v3227_v59  ;;  %v3234_v59 = vld [vmem:[#allocation12_spill] sm:$0xff] }
 0x4e0   :  { %v1927_v52 = vsel %vm1006_vm3, %v1898_v51, 0.0  ;;  %v1926_v49 = vsel %vm1006_vm3, %v1896_v6, 0.0  ;;  %v1922_v61 = vsel %vm1006_vm3, %v1907_v29, 0.0  ;;  %v1904_v50 = vmul.f32 %v1888_v42, %v3228_v37  ;;  %v3233_v29 = vld [vmem:[#allocation11_spill] sm:$0xff] }
 0x4e1   :  { %v2249_v9 = vpop.eup %2248  ;;  %v1862_v40 = vadd.f32 %v1861_v45, %v1860_v56  ;;  %v1919_v27 = vadd.f32 %v1918_v53, %v1917_v54  ;;  %v1929_v20 = vsel %vm1006_vm3, %v1900_v58, 0.0  ;;  %v1928_v7 = vadd.f32 %v1927_v52, %v1926_v49 }
 0x4e2   :  { %v1890_v4 = vmul.f32 %v2249_v9, %v3056_v3  ;;  %v3229_v3 = vld [vmem:[#allocation18_spill] sm:$0xff]  ;;  %v1931_v60 = vsel %vm1006_vm3, %v1902_v13, 0.0  ;;  %v1933_v0 = vsel %vm1006_vm3, %v1904_v50, 0.0 }
 0x4e3   :  { %2254 = vrcp.f32 %v1862_v40  ;;  %v1921_v36 = vadd.f32 %v1920_v25, %v1919_v27  ;;  %v1930_v48 = vadd.f32 %v1929_v20, %v1928_v7 }
 0x4e4   :  { %v1906_v33 = vmul.f32 %v1890_v4, %v3230_v28 }
 0x4e5   :  { %v2251_v12 = vpop.eup %2250  ;;  %v1923_v26 = vadd.f32 %v1922_v61, %v1921_v36  ;;  %v1932_v23 = vadd.f32 %v1931_v60, %v1930_v48 }
 0x4e6   :  { %v1893_v21 = vmul.f32 %v2251_v12, %v3060_v34  ;;  %v1935_v1 = vsel %vm1006_vm3, %v1906_v33, 0.0  ;;  %v3235_v12 = vmov 0.0  }
 0x4e7   :  { %v2253_v30 = vpop.eup %2252  ;;  %v1934_v16 = vadd.f32 %v1933_v0, %v1932_v23 }
 0x4e8   :  { %v1909_v41 = vmul.f32 %v1893_v21, %v3229_v3  ;;  %v1892_v35 = vmul.f32 %v2253_v30, %v3064_v31 }
 0x4e9   :  { %v1936_v38 = vadd.f32 %v1935_v1, %v1934_v16 }
 0x4ea   :  { %v1924_v34 = vsel %vm1006_vm3, %v1909_v41, 0.0  ;;  %v1908_v63 = vmul.f32 %v1892_v35, %v3231_v44 }
 0x4eb   :  { %v1925_v8 = vadd.f32 %v1924_v34, %v1923_v26 }
 0x4ec   :  { %v1937_v39 = vsel %vm1006_vm3, %v1908_v63, 0.0 }
 0x4ed   :  { %v2255_v11 = vpop.eup %2254  ;;  %v1941_v10 = vmul.f32 %v1925_v8, %v1925_v8  ;;  %v1938_v56 = vadd.f32 %v1937_v39, %v1936_v38 }
 0x4ee   :  { %v1894_v31 = vmul.f32 %v2255_v11, %v3070_v14 }
 0x4ef   :  { %v1943_v15 = vsel %vm1006_vm3, %v1941_v10, 0.0 }
 0x4f0   :  { %1944 = vadd.xlane.f32.xlu1 %v1943_v15  ;;  %v1910_v32 = vmul.f32 %v1894_v31, %v3232_v22 }
 0x4f2   :  { %v1939_v43 = vsel %vm1006_vm3, %v1910_v32, 0.0 }
 0x4f3   :  { %v1940_v19 = vadd.f32 %v1939_v43, %v1938_v56 }
 0x4f5   :  { %v1942_v62 = vmul.f32 %v1940_v19, %v1940_v19 }
 0x4f7   :  { %v1946_v18 = vsel %vm1006_vm3, %v1942_v62, 0.0 }
 0x4f8   :  { %1947 = vadd.xlane.f32.xlu0 %v1946_v18 }
 0x57d   :  { %v1945_v57 = vpop.xlane.xlu1 %1944 }
 0x57e   :  { %v1949_v24 = vadd.f32 1.0, %v1945_v57  ;;  %v1957_v45 = vadd.f32 1e-12, %v1945_v57 }
 0x580   :  { %2256 = vrcp.f32 %v1949_v24 }
 0x585   :  { %v1948_v14 = vpop.xlane.xlu0 %1947 }
 0x586   :  { %v1950_v55 = vadd.f32 1.0, %v1948_v14  ;;  %v1958_v51 = vadd.f32 1e-12, %v1948_v14 }
 0x588   :  { %2258 = vrcp.f32 %v1950_v55 }
 0x589   :  { %2260 = vrsqrt.f32 %v1957_v45 }
 0x58a   :  { %v2257_v47 = vpop.eup %2256  ;;  %2262 = vrsqrt.f32 %v1958_v51 }
 0x58b   :  { %v1953_v2 = vmul.f32 %v2257_v47, %v1945_v57 }
 0x58d   :  { %v1955_v5 = vmul.f32 %v1953_v2, %v1925_v8 }
 0x592   :  { %v2259_v9 = vpop.eup %2258 }
 0x593   :  { %v1954_v6 = vmul.f32 %v2259_v9, %v1948_v14  ;;  %v2261_v40 = vpop.eup %2260 }
 0x594   :  { %v1961_v17 = vmul.f32 %v2261_v40, %v1955_v5  ;;  %v2263_v42 = vpop.eup %2262 }
 0x595   :  { %v1956_v58 = vmul.f32 %v1954_v6, %v1940_v19 }
 0x596   :  { %v1968_v53 = vrot.slane %v1961_v17, %v3233_v29 }
 0x597   :  { %v1969_v46 = vmul.f32 %v2263_v42, %v1956_v58 }
 0x599   :  { %v1976_v54 = vrot.slane %v1969_v46, %v3233_v29 }
 0x59b   :  { %v1978_v25 = vcombine.high %v1968_v53, %v1976_v54  ;;  %v1977_v4 = vcombine.low %v1968_v53, %v1976_v54 }
 0x59d   :  { %v1992_v13 = vrot.slane %v1978_v25, %v3234_v59  ;;  %v1985_v52 = vrot.slane %v1977_v4, %v3234_v59 }
 0x59f   :  { %2000 = vrot.lane.b32.xlu0 %v1992_v13, %s2347_s8  ;;  %v1993_v27 = vcombine.high %v1985_v52, %v3235_v12  ;;  %v1994_v49 = vcombine.high %v1992_v13, %v3235_v12 }
 0x5a1   :  { %1996 = vrot.lane.b32.xlu1 %v1993_v27, %s2348_s9 }
 0x5a5   :  { %2004 = vrot.lane.b32.xlu1 %v1994_v49, %s2349_s10 }
 0x611   :  { %v2001_v37 = vpop.permute.xlu0 %2000 }
 0x613   :  { %v1997_v21 = vpop.permute.xlu1 %1996 }
 0x614   :  { %v2008_v61 = vsel %vm2007_vm4, %v1985_v52, %v1997_v21 }
 0x615   :  { %v2010_v50 = vsel %vm2009_vm5, %v2008_v61, %v2001_v37 }
 0x617   :  { %v2005_v20 = vpop.permute.xlu1 %2004 }
 0x618   :  { %v2012_v30 = vsel %vm2011_vm6, %v2010_v50, %v2005_v20 }
 0x619   :  { %2014 = vst.msk [vmem:[#allocation7] sm:$0x3] %vm2013_vm7, %v2012_v30 }
 0x61a   :  { %2319 = shalt.err (!%p2316_p6)
}
 0x61b   :  { %s2320_s16 = scalar_lea.hbm %s3142_s2, 32 }
 0x61c   :  { %p2321_p7 = scmp.ne.s32.totalorder %s3142_s2, %s2320_s16  ;;  %p2324_p8 = scmp.lt.u32.totalorder %s2320_s16, %s3142_s2 }
 0x61e   :  { %p2326_p9 = pnand %p2324_p8, %p2321_p7 }
 0x620   :  { %2329 = shalt.err (!%p2326_p9)
}
 0x621   :  { %2024 = dma.vmem_to_hbm [thread:$0]  %s2022_s12, 32, %s3142_s2, [#allocation4]  }
 0x622   :  { %2334 = dma.done.wait [#allocation4], 32  }
 0x623   :  { %2335 = vsyncadd [#allocation4], 4294967264 }
 0x624   :  { %2028 = vsyncpa [#allocation3], 1 }
 0x625   :  { %2029 = vsyncpa [#allocation6], 1 }
 0x626   :  { %2030 = vsyncpa [#allocation4], 1 }

</bundles_post_ra>
